<compile_context>
chip_gen: v7x
topology: tpu7x:2x2x1
jax: 0.10.0
libtpu: 0.0.40
codegen_flags: <defaults>
</compile_context>

<pallas_src>
import functools

import jax
import jax.numpy as jnp
from jax.experimental import pallas as pl
from jax.experimental.pallas import tpu as pltpu


# -----------------------------------------------------------------------------
# Kernel
# -----------------------------------------------------------------------------
def _lstm_actor_kernel(
    x_ref,          # (T*B, S)   time-major, flattened in the wrapper, bf16
    w_emb_ref,      # (S, H)     bf16
    b_emb_ref,      # (1, H)     f32
    w_ih0_ref,      # (H, 4H)    bf16, gate order i, f, g, o (PyTorch)
    b0_ref,         # (1, 4H)    f32  = b_ih_l0 + b_hh_l0
    w_big_ref,      # (2H, 8H)   bf16 = [[w_hh0, w_ih1], [0, w_hh1]]
    b1_ref,         # (1, 4H)    f32  = b_ih_l1 + b_hh_l1
    w_out_ref,      # (H, A)     bf16
    b_out_ref,      # (1, A)     f32
    out_ref,        # (B, A)     f32
    *,
    seq_len: int,
    batch: int,
    max_action: float,
):
    T, B = seq_len, batch
    H = w_emb_ref.shape[1]
    G = 4 * H
    f32, bf16 = jnp.float32, jnp.bfloat16

    # ---- hoisted, non-recurrent compute (one big-M matmul each) -------------
    # embedding + ReLU for all timesteps (LayerNorm is Identity here)
    e = jnp.maximum(
        jnp.dot(x_ref[...], w_emb_ref[...], preferred_element_type=f32)
        + b_emb_ref[...],
        0.0,
    )                                                            # (T*B, H) f32
    # layer-0 input-side gate term for every timestep, bias folded in
    g0_all = (
        jnp.dot(e.astype(bf16), w_ih0_ref[...], preferred_element_type=f32)
        + b0_ref[...]
    )                                                            # (T*B, 4H) f32

    # loop-invariant operands hoisted out of the recurrence
    w_big = w_big_ref[...]                                       # (2H, 8H) bf16
    b1 = jnp.broadcast_to(b1_ref[...], (B, G))                   # (B, 4H)  f32

    def gates_to_hc(gates, c):
        # Two full-width EUP ops on the (B, 4H) = one-vreg gate value instead
        # of four 32-lane transcendentals; sigmoid via the tanh identity
        # (one EUP push + cheap VPU scale/add instead of exp + reciprocal).
        s = 0.5 * jnp.tanh(0.5 * gates) + 0.5    # sigmoid(gates), full width
        tg = jnp.tanh(gates)                     # tanh(gates),    full width
        i = s[:, 0 * H:1 * H]
        f = s[:, 1 * H:2 * H]
        g = tg[:, 2 * H:3 * H]
        o = s[:, 3 * H:4 * H]
        c_new = f * c + i * g
        h_new = o * jnp.tanh(c_new)
        return h_new, c_new

    zeros = jnp.zeros((B, H), f32)

    # prologue: step 0, layer 0 (h0_{-1} = 0, so no hidden-side matmul)
    h0, c0 = gates_to_hc(g0_all[0:B, :], zeros)
    h1, c1 = zeros, zeros

    # Wavefront recurrence: one matmul per step.  Static Python loop -> fully
    # unrolled at trace time with static row slices of g0_all (T is tiny, so
    # live ranges stay well under the vreg budget and the LLO scheduler can
    # overlap successive steps).
    # TODO(synk): on v7x (MRB accumulate), split the w_big matmul into
    # h0 @ w_big[:H] + h1 @ w_big[H:] to drop the per-step lane concat.
    for t in range(T):
        hcat = jnp.concatenate([h0, h1], axis=-1).astype(bf16)       # (B, 2H)
        big = jnp.dot(hcat, w_big, preferred_element_type=f32)       # (B, 8H)
        # layer-1 gates at step t (independent of the layer-0 chain below)
        h1, c1 = gates_to_hc(big[:, G:2 * G] + b1, c1)
        # layer-0 gates at step t+1 (skip after the last timestep)
        if t + 1 < T:
            h0, c0 = gates_to_hc(
                big[:, 0:G] + g0_all[(t + 1) * B:(t + 2) * B, :], c0
            )

    # last_output = lstm_output[:, -1, :] is exactly h1 after the final step
    act = jnp.tanh(
        jnp.dot(h1.astype(bf16), w_out_ref[...], preferred_element_type=f32)
        + b_out_ref[...]
    )
    out_ref[...] = (act * max_action).astype(out_ref.dtype)


# -----------------------------------------------------------------------------
# Wrapper
# -----------------------------------------------------------------------------
def lstm_td3_actor(state_sequence, params, max_action=1.0):
    B, T, S = state_sequence.shape
    H = params["w_emb"].shape[1]
    A = params["w_out"].shape[1]
    bf16 = jnp.bfloat16

    # Time-major + flatten in the wrapper (single XLA relayout outside the
    # kernel); row block t of x2d is state_sequence[:, t, :].
    x2d = jnp.transpose(state_sequence, (1, 0, 2)).reshape(T * B, S).astype(bf16)

    # Wavefront weight: rows 0:H multiply h0_t, rows H:2H multiply h1_{t-1};
    # cols 0:4H -> layer-0 hidden term for step t+1, cols 4H:8H -> layer-1 gates.
    zero_blk = jnp.zeros((H, 4 * H), jnp.float32)
    w_big = jnp.concatenate(
        [jnp.concatenate([params["w_hh0"], params["w_ih1"]], axis=1),
         jnp.concatenate([zero_blk, params["w_hh1"]], axis=1)],
        axis=0,
    )                                                              # (2H, 8H)

    kernel = functools.partial(
        _lstm_actor_kernel, seq_len=T, batch=B, max_action=float(max_action)
    )
    vmem = pl.BlockSpec(memory_space=pltpu.MemorySpace.VMEM)

    # TODO(synk): if this actor serves many envs, pad/stack B to >=128 rows and
    # add a "parallel" leading grid axis (v7x dual TensorCore) — pointless at B=2.
    return pl.pallas_call(
        kernel,
        out_shape=jax.ShapeDtypeStruct((B, A), jnp.float32),
        in_specs=[vmem] * 9,
        out_specs=vmem,
    )(
        x2d,
        params["w_emb"].astype(bf16), params["b_emb"],
        params["w_ih0"].astype(bf16), params["b0"],
        w_big.astype(bf16), params["b1"],
        params["w_out"].astype(bf16), params["b_out"],
    )


# -----------------------------------------------------------------------------
# Deterministic parameter init (PyTorch-style uniform(-1/sqrt(fan), 1/sqrt(fan)))
# -----------------------------------------------------------------------------
def init_params(key, state_dim, action_dim, hidden_dim):
    def uniform(k, shape, fan):
        bound = 1.0 / jnp.sqrt(fan)
        return jax.random.uniform(k, shape, jnp.float32, -bound, bound)

    ks = jax.random.split(key, 16)
    H = hidden_dim
    params = {
        "w_emb": uniform(ks[0], (state_dim, H), state_dim),
        "b_emb": uniform(ks[1], (1, H), state_dim),
        # LSTM layer 0
        "w_ih0": uniform(ks[2], (H, 4 * H), H),
        "w_hh0": uniform(ks[3], (H, 4 * H), H),
        "b0": uniform(ks[4], (1, 4 * H), H) + uniform(ks[5], (1, 4 * H), H),
        # LSTM layer 1
        "w_ih1": uniform(ks[6], (H, 4 * H), H),
        "w_hh1": uniform(ks[7], (H, 4 * H), H),
        "b1": uniform(ks[8], (1, 4 * H), H) + uniform(ks[9], (1, 4 * H), H),
        # output head
        "w_out": uniform(ks[10], (H, action_dim), H),
        "b_out": uniform(ks[11], (1, action_dim), H),
    }
    return params


# -----------------------------------------------------------------------------
# Pure-JAX f32 reference for correctness checking
# -----------------------------------------------------------------------------
def lstm_td3_actor_ref(x, p, max_action=1.0):
    B, T, S = x.shape
    H = p["w_emb"].shape[1]

    def cell(inp, h, c, w_ih, w_hh, b):
        g = inp @ w_ih + h @ w_hh + b
        i = jax.nn.sigmoid(g[:, 0 * H:1 * H])
        f = jax.nn.sigmoid(g[:, 1 * H:2 * H])
        gg = jnp.tanh(g[:, 2 * H:3 * H])
        o = jax.nn.sigmoid(g[:, 3 * H:4 * H])
        c = f * c + i * gg
        h = o * jnp.tanh(c)
        return h, c

    h0 = c0 = h1 = c1 = jnp.zeros((B, H), jnp.float32)
    for t in range(T):
        e = jnp.maximum(x[:, t, :] @ p["w_emb"] + p["b_emb"], 0.0)
        h0, c0 = cell(e, h0, c0, p["w_ih0"], p["w_hh0"], p["b0"])
        h1, c1 = cell(h0, h1, c1, p["w_ih1"], p["w_hh1"], p["b1"])
    return jnp.tanh(h1 @ p["w_out"] + p["b_out"]) * max_action


# -----------------------------------------------------------------------------
if __name__ == "__main__":
    # small shapes consistent with the module's forward:
    # state_sequence: (batch=2, seq=8, state_dim=16); hidden=32; action_dim=4
    B, T, STATE_DIM, HIDDEN_DIM, ACTION_DIM = 2, 8, 16, 32, 4
    MAX_ACTION = 1.0

    key = jax.random.PRNGKey(0)
    k_x, k_p = jax.random.split(key)
    x = jax.random.normal(k_x, (B, T, STATE_DIM), jnp.float32)
    params = init_params(k_p, STATE_DIM, ACTION_DIM, HIDDEN_DIM)

    out = lstm_td3_actor(x, params, MAX_ACTION)
    out = jax.block_until_ready(out)

    ref = lstm_td3_actor_ref(x, params, MAX_ACTION)
    assert out.shape == (B, ACTION_DIM)
    # bf16 MXU operands (f32 accumulation) -> relaxed tolerance vs f32 reference
    assert jnp.allclose(out, ref, atol=2e-2, rtol=2e-2), (out, ref)

    print("KERNEL_OK")
</pallas_src>

<mosaic_0001>
module attributes {stable_mosaic.version = 11 : i64} {
  func.func @_lstm_actor_kernel(%arg0: memref<16x16xbf16, #tpu.memory_space<vmem>>, %arg1: memref<16x32xbf16, #tpu.memory_space<vmem>>, %arg2: memref<1x32xf32, #tpu.memory_space<vmem>>, %arg3: memref<32x128xbf16, #tpu.memory_space<vmem>>, %arg4: memref<1x128xf32, #tpu.memory_space<vmem>>, %arg5: memref<64x256xbf16, #tpu.memory_space<vmem>>, %arg6: memref<1x128xf32, #tpu.memory_space<vmem>>, %arg7: memref<32x4xbf16, #tpu.memory_space<vmem>>, %arg8: memref<1x4xf32, #tpu.memory_space<vmem>>, %arg9: memref<2x4xf32, #tpu.memory_space<vmem>>) attributes {dimension_semantics = [], scalar_prefetch = 0 : i64, scratch_operands = 0 : i64, tpu.core_type = #tpu.core_type<tc>} {
    %c0 = arith.constant 0 : index
    %c0_0 = arith.constant 0 : index
    %0 = vector.load %arg0[%c0, %c0_0] : memref<16x16xbf16, #tpu.memory_space<vmem>>, vector<16x16xbf16>
    %c0_1 = arith.constant 0 : index
    %c0_2 = arith.constant 0 : index
    %1 = vector.load %arg1[%c0_1, %c0_2] : memref<16x32xbf16, #tpu.memory_space<vmem>>, vector<16x32xbf16>
    %cst = arith.constant dense<0.000000e+00> : vector<16x32xf32>
    %2 = tpu.matmul %0, %1, %cst {dimension_numbers = #tpu.dot_dimension_numbers<[1], [0], [0], [1], [0, 0, 1, 1], [], []>} : vector<16x16xbf16>, vector<16x32xbf16>, vector<16x32xf32> -> vector<16x32xf32>
    %c0_3 = arith.constant 0 : index
    %c0_4 = arith.constant 0 : index
    %3 = vector.load %arg2[%c0_3, %c0_4] : memref<1x32xf32, #tpu.memory_space<vmem>>, vector<1x32xf32>
    %4 = vector.broadcast %3 : vector<1x32xf32> to vector<16x32xf32>
    %5 = arith.addf %2, %4 : vector<16x32xf32>
    %cst_5 = arith.constant 0.000000e+00 : f32
    %6 = vector.broadcast %cst_5 : f32 to vector<16x32xf32>
    %7 = arith.maximumf %5, %6 : vector<16x32xf32>
    %8 = arith.truncf %7 : vector<16x32xf32> to vector<16x32xbf16>
    %c0_6 = arith.constant 0 : index
    %c0_7 = arith.constant 0 : index
    %9 = vector.load %arg3[%c0_6, %c0_7] : memref<32x128xbf16, #tpu.memory_space<vmem>>, vector<32x128xbf16>
    %cst_8 = arith.constant dense<0.000000e+00> : vector<16x128xf32>
    %10 = tpu.matmul %8, %9, %cst_8 {dimension_numbers = #tpu.dot_dimension_numbers<[1], [0], [0], [1], [0, 0, 1, 1], [], []>} : vector<16x32xbf16>, vector<32x128xbf16>, vector<16x128xf32> -> vector<16x128xf32>
    %c0_9 = arith.constant 0 : index
    %c0_10 = arith.constant 0 : index
    %11 = vector.load %arg4[%c0_9, %c0_10] : memref<1x128xf32, #tpu.memory_space<vmem>>, vector<1x128xf32>
    %12 = vector.broadcast %11 : vector<1x128xf32> to vector<16x128xf32>
    %13 = arith.addf %10, %12 : vector<16x128xf32>
    %c0_11 = arith.constant 0 : index
    %c0_12 = arith.constant 0 : index
    %14 = vector.load %arg5[%c0_11, %c0_12] : memref<64x256xbf16, #tpu.memory_space<vmem>>, vector<64x256xbf16>
    %c0_13 = arith.constant 0 : index
    %c0_14 = arith.constant 0 : index
    %15 = vector.load %arg6[%c0_13, %c0_14] : memref<1x128xf32, #tpu.memory_space<vmem>>, vector<1x128xf32>
    %16 = vector.shape_cast %15 : vector<1x128xf32> to vector<1x128xf32>
    %17 = vector.broadcast %16 : vector<1x128xf32> to vector<2x128xf32>
    %cst_15 = arith.constant 0.000000e+00 : f32
    %18 = vector.broadcast %cst_15 : f32 to vector<2x32xf32>
    %19 = vector.extract_strided_slice %13 {offsets = [0, 0], sizes = [2, 128], strides = [1, 1]} : vector<16x128xf32> to vector<2x128xf32>
    %cst_16 = arith.constant 5.000000e-01 : f32
    %20 = vector.broadcast %cst_16 : f32 to vector<2x128xf32>
    %21 = arith.mulf %20, %19 : vector<2x128xf32>
    %22 = math.tanh %21 : vector<2x128xf32>
    %cst_17 = arith.constant 5.000000e-01 : f32
    %23 = vector.broadcast %cst_17 : f32 to vector<2x128xf32>
    %24 = arith.mulf %23, %22 : vector<2x128xf32>
    %cst_18 = arith.constant 5.000000e-01 : f32
    %25 = vector.broadcast %cst_18 : f32 to vector<2x128xf32>
    %26 = arith.addf %24, %25 : vector<2x128xf32>
    %27 = math.tanh %19 : vector<2x128xf32>
    %28 = vector.extract_strided_slice %26 {offsets = [0, 0], sizes = [2, 32], strides = [1, 1]} : vector<2x128xf32> to vector<2x32xf32>
    %29 = vector.extract_strided_slice %26 {offsets = [0, 32], sizes = [2, 32], strides = [1, 1]} : vector<2x128xf32> to vector<2x32xf32>
    %30 = vector.extract_strided_slice %27 {offsets = [0, 64], sizes = [2, 32], strides = [1, 1]} : vector<2x128xf32> to vector<2x32xf32>
    %31 = vector.extract_strided_slice %26 {offsets = [0, 96], sizes = [2, 32], strides = [1, 1]} : vector<2x128xf32> to vector<2x32xf32>
    %32 = arith.mulf %29, %18 : vector<2x32xf32>
    %33 = arith.mulf %28, %30 : vector<2x32xf32>
    %34 = arith.addf %32, %33 : vector<2x32xf32>
    %35 = math.tanh %34 : vector<2x32xf32>
    %36 = arith.mulf %31, %35 : vector<2x32xf32>
    %37 = tpu.concatenate %36, %18 in 1 : vector<2x32xf32>, vector<2x32xf32> -> vector<2x64xf32>
    %38 = arith.truncf %37 : vector<2x64xf32> to vector<2x64xbf16>
    %cst_19 = arith.constant dense<0.000000e+00> : vector<2x256xf32>
    %39 = tpu.matmul %38, %14, %cst_19 {dimension_numbers = #tpu.dot_dimension_numbers<[1], [0], [0], [1], [0, 0, 1, 1], [], []>} : vector<2x64xbf16>, vector<64x256xbf16>, vector<2x256xf32> -> vector<2x256xf32>
    %40 = vector.extract_strided_slice %39 {offsets = [0, 128], sizes = [2, 128], strides = [1, 1]} : vector<2x256xf32> to vector<2x128xf32>
    %41 = arith.addf %40, %17 : vector<2x128xf32>
    %cst_20 = arith.constant 5.000000e-01 : f32
    %42 = vector.broadcast %cst_20 : f32 to vector<2x128xf32>
    %43 = arith.mulf %42, %41 : vector<2x128xf32>
    %44 = math.tanh %43 : vector<2x128xf32>
    %cst_21 = arith.constant 5.000000e-01 : f32
    %45 = vector.broadcast %cst_21 : f32 to vector<2x128xf32>
    %46 = arith.mulf %45, %44 : vector<2x128xf32>
    %cst_22 = arith.constant 5.000000e-01 : f32
    %47 = vector.broadcast %cst_22 : f32 to vector<2x128xf32>
    %48 = arith.addf %46, %47 : vector<2x128xf32>
    %49 = math.tanh %41 : vector<2x128xf32>
    %50 = vector.extract_strided_slice %48 {offsets = [0, 0], sizes = [2, 32], strides = [1, 1]} : vector<2x128xf32> to vector<2x32xf32>
    %51 = vector.extract_strided_slice %48 {offsets = [0, 32], sizes = [2, 32], strides = [1, 1]} : vector<2x128xf32> to vector<2x32xf32>
    %52 = vector.extract_strided_slice %49 {offsets = [0, 64], sizes = [2, 32], strides = [1, 1]} : vector<2x128xf32> to vector<2x32xf32>
    %53 = vector.extract_strided_slice %48 {offsets = [0, 96], sizes = [2, 32], strides = [1, 1]} : vector<2x128xf32> to vector<2x32xf32>
    %54 = arith.mulf %51, %18 : vector<2x32xf32>
    %55 = arith.mulf %50, %52 : vector<2x32xf32>
    %56 = arith.addf %54, %55 : vector<2x32xf32>
    %57 = math.tanh %56 : vector<2x32xf32>
    %58 = arith.mulf %53, %57 : vector<2x32xf32>
    %59 = vector.extract_strided_slice %39 {offsets = [0, 0], sizes = [2, 128], strides = [1, 1]} : vector<2x256xf32> to vector<2x128xf32>
    %60 = vector.extract_strided_slice %13 {offsets = [2, 0], sizes = [2, 128], strides = [1, 1]} : vector<16x128xf32> to vector<2x128xf32>
    %61 = arith.addf %59, %60 : vector<2x128xf32>
    %cst_23 = arith.constant 5.000000e-01 : f32
    %62 = vector.broadcast %cst_23 : f32 to vector<2x128xf32>
    %63 = arith.mulf %62, %61 : vector<2x128xf32>
    %64 = math.tanh %63 : vector<2x128xf32>
    %cst_24 = arith.constant 5.000000e-01 : f32
    %65 = vector.broadcast %cst_24 : f32 to vector<2x128xf32>
    %66 = arith.mulf %65, %64 : vector<2x128xf32>
    %cst_25 = arith.constant 5.000000e-01 : f32
    %67 = vector.broadcast %cst_25 : f32 to vector<2x128xf32>
    %68 = arith.addf %66, %67 : vector<2x128xf32>
    %69 = math.tanh %61 : vector<2x128xf32>
    %70 = vector.extract_strided_slice %68 {offsets = [0, 0], sizes = [2, 32], strides = [1, 1]} : vector<2x128xf32> to vector<2x32xf32>
    %71 = vector.extract_strided_slice %68 {offsets = [0, 32], sizes = [2, 32], strides = [1, 1]} : vector<2x128xf32> to vector<2x32xf32>
    %72 = vector.extract_strided_slice %69 {offsets = [0, 64], sizes = [2, 32], strides = [1, 1]} : vector<2x128xf32> to vector<2x32xf32>
    %73 = vector.extract_strided_slice %68 {offsets = [0, 96], sizes = [2, 32], strides = [1, 1]} : vector<2x128xf32> to vector<2x32xf32>
    %74 = arith.mulf %71, %34 : vector<2x32xf32>
    %75 = arith.mulf %70, %72 : vector<2x32xf32>
    %76 = arith.addf %74, %75 : vector<2x32xf32>
    %77 = math.tanh %76 : vector<2x32xf32>
    %78 = arith.mulf %73, %77 : vector<2x32xf32>
    %79 = tpu.concatenate %78, %58 in 1 : vector<2x32xf32>, vector<2x32xf32> -> vector<2x64xf32>
    %80 = arith.truncf %79 : vector<2x64xf32> to vector<2x64xbf16>
    %cst_26 = arith.constant dense<0.000000e+00> : vector<2x256xf32>
    %81 = tpu.matmul %80, %14, %cst_26 {dimension_numbers = #tpu.dot_dimension_numbers<[1], [0], [0], [1], [0, 0, 1, 1], [], []>} : vector<2x64xbf16>, vector<64x256xbf16>, vector<2x256xf32> -> vector<2x256xf32>
    %82 = vector.extract_strided_slice %81 {offsets = [0, 128], sizes = [2, 128], strides = [1, 1]} : vector<2x256xf32> to vector<2x128xf32>
    %83 = arith.addf %82, %17 : vector<2x128xf32>
    %cst_27 = arith.constant 5.000000e-01 : f32
    %84 = vector.broadcast %cst_27 : f32 to vector<2x128xf32>
    %85 = arith.mulf %84, %83 : vector<2x128xf32>
    %86 = math.tanh %85 : vector<2x128xf32>
    %cst_28 = arith.constant 5.000000e-01 : f32
    %87 = vector.broadcast %cst_28 : f32 to vector<2x128xf32>
    %88 = arith.mulf %87, %86 : vector<2x128xf32>
    %cst_29 = arith.constant 5.000000e-01 : f32
    %89 = vector.broadcast %cst_29 : f32 to vector<2x128xf32>
    %90 = arith.addf %88, %89 : vector<2x128xf32>
    %91 = math.tanh %83 : vector<2x128xf32>
    %92 = vector.extract_strided_slice %90 {offsets = [0, 0], sizes = [2, 32], strides = [1, 1]} : vector<2x128xf32> to vector<2x32xf32>
    %93 = vector.extract_strided_slice %90 {offsets = [0, 32], sizes = [2, 32], strides = [1, 1]} : vector<2x128xf32> to vector<2x32xf32>
    %94 = vector.extract_strided_slice %91 {offsets = [0, 64], sizes = [2, 32], strides = [1, 1]} : vector<2x128xf32> to vector<2x32xf32>
    %95 = vector.extract_strided_slice %90 {offsets = [0, 96], sizes = [2, 32], strides = [1, 1]} : vector<2x128xf32> to vector<2x32xf32>
    %96 = arith.mulf %93, %56 : vector<2x32xf32>
    %97 = arith.mulf %92, %94 : vector<2x32xf32>
    %98 = arith.addf %96, %97 : vector<2x32xf32>
    %99 = math.tanh %98 : vector<2x32xf32>
    %100 = arith.mulf %95, %99 : vector<2x32xf32>
    %101 = vector.extract_strided_slice %81 {offsets = [0, 0], sizes = [2, 128], strides = [1, 1]} : vector<2x256xf32> to vector<2x128xf32>
    %102 = vector.extract_strided_slice %13 {offsets = [4, 0], sizes = [2, 128], strides = [1, 1]} : vector<16x128xf32> to vector<2x128xf32>
    %103 = arith.addf %101, %102 : vector<2x128xf32>
    %cst_30 = arith.constant 5.000000e-01 : f32
    %104 = vector.broadcast %cst_30 : f32 to vector<2x128xf32>
    %105 = arith.mulf %104, %103 : vector<2x128xf32>
    %106 = math.tanh %105 : vector<2x128xf32>
    %cst_31 = arith.constant 5.000000e-01 : f32
    %107 = vector.broadcast %cst_31 : f32 to vector<2x128xf32>
    %108 = arith.mulf %107, %106 : vector<2x128xf32>
    %cst_32 = arith.constant 5.000000e-01 : f32
    %109 = vector.broadcast %cst_32 : f32 to vector<2x128xf32>
    %110 = arith.addf %108, %109 : vector<2x128xf32>
    %111 = math.tanh %103 : vector<2x128xf32>
    %112 = vector.extract_strided_slice %110 {offsets = [0, 0], sizes = [2, 32], strides = [1, 1]} : vector<2x128xf32> to vector<2x32xf32>
    %113 = vector.extract_strided_slice %110 {offsets = [0, 32], sizes = [2, 32], strides = [1, 1]} : vector<2x128xf32> to vector<2x32xf32>
    %114 = vector.extract_strided_slice %111 {offsets = [0, 64], sizes = [2, 32], strides = [1, 1]} : vector<2x128xf32> to vector<2x32xf32>
    %115 = vector.extract_strided_slice %110 {offsets = [0, 96], sizes = [2, 32], strides = [1, 1]} : vector<2x128xf32> to vector<2x32xf32>
    %116 = arith.mulf %113, %76 : vector<2x32xf32>
    %117 = arith.mulf %112, %114 : vector<2x32xf32>
    %118 = arith.addf %116, %117 : vector<2x32xf32>
    %119 = math.tanh %118 : vector<2x32xf32>
    %120 = arith.mulf %115, %119 : vector<2x32xf32>
    %121 = tpu.concatenate %120, %100 in 1 : vector<2x32xf32>, vector<2x32xf32> -> vector<2x64xf32>
    %122 = arith.truncf %121 : vector<2x64xf32> to vector<2x64xbf16>
    %cst_33 = arith.constant dense<0.000000e+00> : vector<2x256xf32>
    %123 = tpu.matmul %122, %14, %cst_33 {dimension_numbers = #tpu.dot_dimension_numbers<[1], [0], [0], [1], [0, 0, 1, 1], [], []>} : vector<2x64xbf16>, vector<64x256xbf16>, vector<2x256xf32> -> vector<2x256xf32>
    %124 = vector.extract_strided_slice %123 {offsets = [0, 128], sizes = [2, 128], strides = [1, 1]} : vector<2x256xf32> to vector<2x128xf32>
    %125 = arith.addf %124, %17 : vector<2x128xf32>
    %cst_34 = arith.constant 5.000000e-01 : f32
    %126 = vector.broadcast %cst_34 : f32 to vector<2x128xf32>
    %127 = arith.mulf %126, %125 : vector<2x128xf32>
    %128 = math.tanh %127 : vector<2x128xf32>
    %cst_35 = arith.constant 5.000000e-01 : f32
    %129 = vector.broadcast %cst_35 : f32 to vector<2x128xf32>
    %130 = arith.mulf %129, %128 : vector<2x128xf32>
    %cst_36 = arith.constant 5.000000e-01 : f32
    %131 = vector.broadcast %cst_36 : f32 to vector<2x128xf32>
    %132 = arith.addf %130, %131 : vector<2x128xf32>
    %133 = math.tanh %125 : vector<2x128xf32>
    %134 = vector.extract_strided_slice %132 {offsets = [0, 0], sizes = [2, 32], strides = [1, 1]} : vector<2x128xf32> to vector<2x32xf32>
    %135 = vector.extract_strided_slice %132 {offsets = [0, 32], sizes = [2, 32], strides = [1, 1]} : vector<2x128xf32> to vector<2x32xf32>
    %136 = vector.extract_strided_slice %133 {offsets = [0, 64], sizes = [2, 32], strides = [1, 1]} : vector<2x128xf32> to vector<2x32xf32>
    %137 = vector.extract_strided_slice %132 {offsets = [0, 96], sizes = [2, 32], strides = [1, 1]} : vector<2x128xf32> to vector<2x32xf32>
    %138 = arith.mulf %135, %98 : vector<2x32xf32>
    %139 = arith.mulf %134, %136 : vector<2x32xf32>
    %140 = arith.addf %138, %139 : vector<2x32xf32>
    %141 = math.tanh %140 : vector<2x32xf32>
    %142 = arith.mulf %137, %141 : vector<2x32xf32>
    %143 = vector.extract_strided_slice %123 {offsets = [0, 0], sizes = [2, 128], strides = [1, 1]} : vector<2x256xf32> to vector<2x128xf32>
    %144 = vector.extract_strided_slice %13 {offsets = [6, 0], sizes = [2, 128], strides = [1, 1]} : vector<16x128xf32> to vector<2x128xf32>
    %145 = arith.addf %143, %144 : vector<2x128xf32>
    %cst_37 = arith.constant 5.000000e-01 : f32
    %146 = vector.broadcast %cst_37 : f32 to vector<2x128xf32>
    %147 = arith.mulf %146, %145 : vector<2x128xf32>
    %148 = math.tanh %147 : vector<2x128xf32>
    %cst_38 = arith.constant 5.000000e-01 : f32
    %149 = vector.broadcast %cst_38 : f32 to vector<2x128xf32>
    %150 = arith.mulf %149, %148 : vector<2x128xf32>
    %cst_39 = arith.constant 5.000000e-01 : f32
    %151 = vector.broadcast %cst_39 : f32 to vector<2x128xf32>
    %152 = arith.addf %150, %151 : vector<2x128xf32>
    %153 = math.tanh %145 : vector<2x128xf32>
    %154 = vector.extract_strided_slice %152 {offsets = [0, 0], sizes = [2, 32], strides = [1, 1]} : vector<2x128xf32> to vector<2x32xf32>
    %155 = vector.extract_strided_slice %152 {offsets = [0, 32], sizes = [2, 32], strides = [1, 1]} : vector<2x128xf32> to vector<2x32xf32>
    %156 = vector.extract_strided_slice %153 {offsets = [0, 64], sizes = [2, 32], strides = [1, 1]} : vector<2x128xf32> to vector<2x32xf32>
    %157 = vector.extract_strided_slice %152 {offsets = [0, 96], sizes = [2, 32], strides = [1, 1]} : vector<2x128xf32> to vector<2x32xf32>
    %158 = arith.mulf %155, %118 : vector<2x32xf32>
    %159 = arith.mulf %154, %156 : vector<2x32xf32>
    %160 = arith.addf %158, %159 : vector<2x32xf32>
    %161 = math.tanh %160 : vector<2x32xf32>
    %162 = arith.mulf %157, %161 : vector<2x32xf32>
    %163 = tpu.concatenate %162, %142 in 1 : vector<2x32xf32>, vector<2x32xf32> -> vector<2x64xf32>
    %164 = arith.truncf %163 : vector<2x64xf32> to vector<2x64xbf16>
    %cst_40 = arith.constant dense<0.000000e+00> : vector<2x256xf32>
    %165 = tpu.matmul %164, %14, %cst_40 {dimension_numbers = #tpu.dot_dimension_numbers<[1], [0], [0], [1], [0, 0, 1, 1], [], []>} : vector<2x64xbf16>, vector<64x256xbf16>, vector<2x256xf32> -> vector<2x256xf32>
    %166 = vector.extract_strided_slice %165 {offsets = [0, 128], sizes = [2, 128], strides = [1, 1]} : vector<2x256xf32> to vector<2x128xf32>
    %167 = arith.addf %166, %17 : vector<2x128xf32>
    %cst_41 = arith.constant 5.000000e-01 : f32
    %168 = vector.broadcast %cst_41 : f32 to vector<2x128xf32>
    %169 = arith.mulf %168, %167 : vector<2x128xf32>
    %170 = math.tanh %169 : vector<2x128xf32>
    %cst_42 = arith.constant 5.000000e-01 : f32
    %171 = vector.broadcast %cst_42 : f32 to vector<2x128xf32>
    %172 = arith.mulf %171, %170 : vector<2x128xf32>
    %cst_43 = arith.constant 5.000000e-01 : f32
    %173 = vector.broadcast %cst_43 : f32 to vector<2x128xf32>
    %174 = arith.addf %172, %173 : vector<2x128xf32>
    %175 = math.tanh %167 : vector<2x128xf32>
    %176 = vector.extract_strided_slice %174 {offsets = [0, 0], sizes = [2, 32], strides = [1, 1]} : vector<2x128xf32> to vector<2x32xf32>
    %177 = vector.extract_strided_slice %174 {offsets = [0, 32], sizes = [2, 32], strides = [1, 1]} : vector<2x128xf32> to vector<2x32xf32>
    %178 = vector.extract_strided_slice %175 {offsets = [0, 64], sizes = [2, 32], strides = [1, 1]} : vector<2x128xf32> to vector<2x32xf32>
    %179 = vector.extract_strided_slice %174 {offsets = [0, 96], sizes = [2, 32], strides = [1, 1]} : vector<2x128xf32> to vector<2x32xf32>
    %180 = arith.mulf %177, %140 : vector<2x32xf32>
    %181 = arith.mulf %176, %178 : vector<2x32xf32>
    %182 = arith.addf %180, %181 : vector<2x32xf32>
    %183 = math.tanh %182 : vector<2x32xf32>
    %184 = arith.mulf %179, %183 : vector<2x32xf32>
    %185 = vector.extract_strided_slice %165 {offsets = [0, 0], sizes = [2, 128], strides = [1, 1]} : vector<2x256xf32> to vector<2x128xf32>
    %186 = vector.extract_strided_slice %13 {offsets = [8, 0], sizes = [2, 128], strides = [1, 1]} : vector<16x128xf32> to vector<2x128xf32>
    %187 = arith.addf %185, %186 : vector<2x128xf32>
    %cst_44 = arith.constant 5.000000e-01 : f32
    %188 = vector.broadcast %cst_44 : f32 to vector<2x128xf32>
    %189 = arith.mulf %188, %187 : vector<2x128xf32>
    %190 = math.tanh %189 : vector<2x128xf32>
    %cst_45 = arith.constant 5.000000e-01 : f32
    %191 = vector.broadcast %cst_45 : f32 to vector<2x128xf32>
    %192 = arith.mulf %191, %190 : vector<2x128xf32>
    %cst_46 = arith.constant 5.000000e-01 : f32
    %193 = vector.broadcast %cst_46 : f32 to vector<2x128xf32>
    %194 = arith.addf %192, %193 : vector<2x128xf32>
    %195 = math.tanh %187 : vector<2x128xf32>
    %196 = vector.extract_strided_slice %194 {offsets = [0, 0], sizes = [2, 32], strides = [1, 1]} : vector<2x128xf32> to vector<2x32xf32>
    %197 = vector.extract_strided_slice %194 {offsets = [0, 32], sizes = [2, 32], strides = [1, 1]} : vector<2x128xf32> to vector<2x32xf32>
    %198 = vector.extract_strided_slice %195 {offsets = [0, 64], sizes = [2, 32], strides = [1, 1]} : vector<2x128xf32> to vector<2x32xf32>
    %199 = vector.extract_strided_slice %194 {offsets = [0, 96], sizes = [2, 32], strides = [1, 1]} : vector<2x128xf32> to vector<2x32xf32>
    %200 = arith.mulf %197, %160 : vector<2x32xf32>
    %201 = arith.mulf %196, %198 : vector<2x32xf32>
    %202 = arith.addf %200, %201 : vector<2x32xf32>
    %203 = math.tanh %202 : vector<2x32xf32>
    %204 = arith.mulf %199, %203 : vector<2x32xf32>
    %205 = tpu.concatenate %204, %184 in 1 : vector<2x32xf32>, vector<2x32xf32> -> vector<2x64xf32>
    %206 = arith.truncf %205 : vector<2x64xf32> to vector<2x64xbf16>
    %cst_47 = arith.constant dense<0.000000e+00> : vector<2x256xf32>
    %207 = tpu.matmul %206, %14, %cst_47 {dimension_numbers = #tpu.dot_dimension_numbers<[1], [0], [0], [1], [0, 0, 1, 1], [], []>} : vector<2x64xbf16>, vector<64x256xbf16>, vector<2x256xf32> -> vector<2x256xf32>
    %208 = vector.extract_strided_slice %207 {offsets = [0, 128], sizes = [2, 128], strides = [1, 1]} : vector<2x256xf32> to vector<2x128xf32>
    %209 = arith.addf %208, %17 : vector<2x128xf32>
    %cst_48 = arith.constant 5.000000e-01 : f32
    %210 = vector.broadcast %cst_48 : f32 to vector<2x128xf32>
    %211 = arith.mulf %210, %209 : vector<2x128xf32>
    %212 = math.tanh %211 : vector<2x128xf32>
    %cst_49 = arith.constant 5.000000e-01 : f32
    %213 = vector.broadcast %cst_49 : f32 to vector<2x128xf32>
    %214 = arith.mulf %213, %212 : vector<2x128xf32>
    %cst_50 = arith.constant 5.000000e-01 : f32
    %215 = vector.broadcast %cst_50 : f32 to vector<2x128xf32>
    %216 = arith.addf %214, %215 : vector<2x128xf32>
    %217 = math.tanh %209 : vector<2x128xf32>
    %218 = vector.extract_strided_slice %216 {offsets = [0, 0], sizes = [2, 32], strides = [1, 1]} : vector<2x128xf32> to vector<2x32xf32>
    %219 = vector.extract_strided_slice %216 {offsets = [0, 32], sizes = [2, 32], strides = [1, 1]} : vector<2x128xf32> to vector<2x32xf32>
    %220 = vector.extract_strided_slice %217 {offsets = [0, 64], sizes = [2, 32], strides = [1, 1]} : vector<2x128xf32> to vector<2x32xf32>
    %221 = vector.extract_strided_slice %216 {offsets = [0, 96], sizes = [2, 32], strides = [1, 1]} : vector<2x128xf32> to vector<2x32xf32>
    %222 = arith.mulf %219, %182 : vector<2x32xf32>
    %223 = arith.mulf %218, %220 : vector<2x32xf32>
    %224 = arith.addf %222, %223 : vector<2x32xf32>
    %225 = math.tanh %224 : vector<2x32xf32>
    %226 = arith.mulf %221, %225 : vector<2x32xf32>
    %227 = vector.extract_strided_slice %207 {offsets = [0, 0], sizes = [2, 128], strides = [1, 1]} : vector<2x256xf32> to vector<2x128xf32>
    %228 = vector.extract_strided_slice %13 {offsets = [10, 0], sizes = [2, 128], strides = [1, 1]} : vector<16x128xf32> to vector<2x128xf32>
    %229 = arith.addf %227, %228 : vector<2x128xf32>
    %cst_51 = arith.constant 5.000000e-01 : f32
    %230 = vector.broadcast %cst_51 : f32 to vector<2x128xf32>
    %231 = arith.mulf %230, %229 : vector<2x128xf32>
    %232 = math.tanh %231 : vector<2x128xf32>
    %cst_52 = arith.constant 5.000000e-01 : f32
    %233 = vector.broadcast %cst_52 : f32 to vector<2x128xf32>
    %234 = arith.mulf %233, %232 : vector<2x128xf32>
    %cst_53 = arith.constant 5.000000e-01 : f32
    %235 = vector.broadcast %cst_53 : f32 to vector<2x128xf32>
    %236 = arith.addf %234, %235 : vector<2x128xf32>
    %237 = math.tanh %229 : vector<2x128xf32>
    %238 = vector.extract_strided_slice %236 {offsets = [0, 0], sizes = [2, 32], strides = [1, 1]} : vector<2x128xf32> to vector<2x32xf32>
    %239 = vector.extract_strided_slice %236 {offsets = [0, 32], sizes = [2, 32], strides = [1, 1]} : vector<2x128xf32> to vector<2x32xf32>
    %240 = vector.extract_strided_slice %237 {offsets = [0, 64], sizes = [2, 32], strides = [1, 1]} : vector<2x128xf32> to vector<2x32xf32>
    %241 = vector.extract_strided_slice %236 {offsets = [0, 96], sizes = [2, 32], strides = [1, 1]} : vector<2x128xf32> to vector<2x32xf32>
    %242 = arith.mulf %239, %202 : vector<2x32xf32>
    %243 = arith.mulf %238, %240 : vector<2x32xf32>
    %244 = arith.addf %242, %243 : vector<2x32xf32>
    %245 = math.tanh %244 : vector<2x32xf32>
    %246 = arith.mulf %241, %245 : vector<2x32xf32>
    %247 = tpu.concatenate %246, %226 in 1 : vector<2x32xf32>, vector<2x32xf32> -> vector<2x64xf32>
    %248 = arith.truncf %247 : vector<2x64xf32> to vector<2x64xbf16>
    %cst_54 = arith.constant dense<0.000000e+00> : vector<2x256xf32>
    %249 = tpu.matmul %248, %14, %cst_54 {dimension_numbers = #tpu.dot_dimension_numbers<[1], [0], [0], [1], [0, 0, 1, 1], [], []>} : vector<2x64xbf16>, vector<64x256xbf16>, vector<2x256xf32> -> vector<2x256xf32>
    %250 = vector.extract_strided_slice %249 {offsets = [0, 128], sizes = [2, 128], strides = [1, 1]} : vector<2x256xf32> to vector<2x128xf32>
    %251 = arith.addf %250, %17 : vector<2x128xf32>
    %cst_55 = arith.constant 5.000000e-01 : f32
    %252 = vector.broadcast %cst_55 : f32 to vector<2x128xf32>
    %253 = arith.mulf %252, %251 : vector<2x128xf32>
    %254 = math.tanh %253 : vector<2x128xf32>
    %cst_56 = arith.constant 5.000000e-01 : f32
    %255 = vector.broadcast %cst_56 : f32 to vector<2x128xf32>
    %256 = arith.mulf %255, %254 : vector<2x128xf32>
    %cst_57 = arith.constant 5.000000e-01 : f32
    %257 = vector.broadcast %cst_57 : f32 to vector<2x128xf32>
    %258 = arith.addf %256, %257 : vector<2x128xf32>
    %259 = math.tanh %251 : vector<2x128xf32>
    %260 = vector.extract_strided_slice %258 {offsets = [0, 0], sizes = [2, 32], strides = [1, 1]} : vector<2x128xf32> to vector<2x32xf32>
    %261 = vector.extract_strided_slice %258 {offsets = [0, 32], sizes = [2, 32], strides = [1, 1]} : vector<2x128xf32> to vector<2x32xf32>
    %262 = vector.extract_strided_slice %259 {offsets = [0, 64], sizes = [2, 32], strides = [1, 1]} : vector<2x128xf32> to vector<2x32xf32>
    %263 = vector.extract_strided_slice %258 {offsets = [0, 96], sizes = [2, 32], strides = [1, 1]} : vector<2x128xf32> to vector<2x32xf32>
    %264 = arith.mulf %261, %224 : vector<2x32xf32>
    %265 = arith.mulf %260, %262 : vector<2x32xf32>
    %266 = arith.addf %264, %265 : vector<2x32xf32>
    %267 = math.tanh %266 : vector<2x32xf32>
    %268 = arith.mulf %263, %267 : vector<2x32xf32>
    %269 = vector.extract_strided_slice %249 {offsets = [0, 0], sizes = [2, 128], strides = [1, 1]} : vector<2x256xf32> to vector<2x128xf32>
    %270 = vector.extract_strided_slice %13 {offsets = [12, 0], sizes = [2, 128], strides = [1, 1]} : vector<16x128xf32> to vector<2x128xf32>
    %271 = arith.addf %269, %270 : vector<2x128xf32>
    %cst_58 = arith.constant 5.000000e-01 : f32
    %272 = vector.broadcast %cst_58 : f32 to vector<2x128xf32>
    %273 = arith.mulf %272, %271 : vector<2x128xf32>
    %274 = math.tanh %273 : vector<2x128xf32>
    %cst_59 = arith.constant 5.000000e-01 : f32
    %275 = vector.broadcast %cst_59 : f32 to vector<2x128xf32>
    %276 = arith.mulf %275, %274 : vector<2x128xf32>
    %cst_60 = arith.constant 5.000000e-01 : f32
    %277 = vector.broadcast %cst_60 : f32 to vector<2x128xf32>
    %278 = arith.addf %276, %277 : vector<2x128xf32>
    %279 = math.tanh %271 : vector<2x128xf32>
    %280 = vector.extract_strided_slice %278 {offsets = [0, 0], sizes = [2, 32], strides = [1, 1]} : vector<2x128xf32> to vector<2x32xf32>
    %281 = vector.extract_strided_slice %278 {offsets = [0, 32], sizes = [2, 32], strides = [1, 1]} : vector<2x128xf32> to vector<2x32xf32>
    %282 = vector.extract_strided_slice %279 {offsets = [0, 64], sizes = [2, 32], strides = [1, 1]} : vector<2x128xf32> to vector<2x32xf32>
    %283 = vector.extract_strided_slice %278 {offsets = [0, 96], sizes = [2, 32], strides = [1, 1]} : vector<2x128xf32> to vector<2x32xf32>
    %284 = arith.mulf %281, %244 : vector<2x32xf32>
    %285 = arith.mulf %280, %282 : vector<2x32xf32>
    %286 = arith.addf %284, %285 : vector<2x32xf32>
    %287 = math.tanh %286 : vector<2x32xf32>
    %288 = arith.mulf %283, %287 : vector<2x32xf32>
    %289 = tpu.concatenate %288, %268 in 1 : vector<2x32xf32>, vector<2x32xf32> -> vector<2x64xf32>
    %290 = arith.truncf %289 : vector<2x64xf32> to vector<2x64xbf16>
    %cst_61 = arith.constant dense<0.000000e+00> : vector<2x256xf32>
    %291 = tpu.matmul %290, %14, %cst_61 {dimension_numbers = #tpu.dot_dimension_numbers<[1], [0], [0], [1], [0, 0, 1, 1], [], []>} : vector<2x64xbf16>, vector<64x256xbf16>, vector<2x256xf32> -> vector<2x256xf32>
    %292 = vector.extract_strided_slice %291 {offsets = [0, 128], sizes = [2, 128], strides = [1, 1]} : vector<2x256xf32> to vector<2x128xf32>
    %293 = arith.addf %292, %17 : vector<2x128xf32>
    %cst_62 = arith.constant 5.000000e-01 : f32
    %294 = vector.broadcast %cst_62 : f32 to vector<2x128xf32>
    %295 = arith.mulf %294, %293 : vector<2x128xf32>
    %296 = math.tanh %295 : vector<2x128xf32>
    %cst_63 = arith.constant 5.000000e-01 : f32
    %297 = vector.broadcast %cst_63 : f32 to vector<2x128xf32>
    %298 = arith.mulf %297, %296 : vector<2x128xf32>
    %cst_64 = arith.constant 5.000000e-01 : f32
    %299 = vector.broadcast %cst_64 : f32 to vector<2x128xf32>
    %300 = arith.addf %298, %299 : vector<2x128xf32>
    %301 = math.tanh %293 : vector<2x128xf32>
    %302 = vector.extract_strided_slice %300 {offsets = [0, 0], sizes = [2, 32], strides = [1, 1]} : vector<2x128xf32> to vector<2x32xf32>
    %303 = vector.extract_strided_slice %300 {offsets = [0, 32], sizes = [2, 32], strides = [1, 1]} : vector<2x128xf32> to vector<2x32xf32>
    %304 = vector.extract_strided_slice %301 {offsets = [0, 64], sizes = [2, 32], strides = [1, 1]} : vector<2x128xf32> to vector<2x32xf32>
    %305 = vector.extract_strided_slice %300 {offsets = [0, 96], sizes = [2, 32], strides = [1, 1]} : vector<2x128xf32> to vector<2x32xf32>
    %306 = arith.mulf %303, %266 : vector<2x32xf32>
    %307 = arith.mulf %302, %304 : vector<2x32xf32>
    %308 = arith.addf %306, %307 : vector<2x32xf32>
    %309 = math.tanh %308 : vector<2x32xf32>
    %310 = arith.mulf %305, %309 : vector<2x32xf32>
    %311 = vector.extract_strided_slice %291 {offsets = [0, 0], sizes = [2, 128], strides = [1, 1]} : vector<2x256xf32> to vector<2x128xf32>
    %312 = vector.extract_strided_slice %13 {offsets = [14, 0], sizes = [2, 128], strides = [1, 1]} : vector<16x128xf32> to vector<2x128xf32>
    %313 = arith.addf %311, %312 : vector<2x128xf32>
    %cst_65 = arith.constant 5.000000e-01 : f32
    %314 = vector.broadcast %cst_65 : f32 to vector<2x128xf32>
    %315 = arith.mulf %314, %313 : vector<2x128xf32>
    %316 = math.tanh %315 : vector<2x128xf32>
    %cst_66 = arith.constant 5.000000e-01 : f32
    %317 = vector.broadcast %cst_66 : f32 to vector<2x128xf32>
    %318 = arith.mulf %317, %316 : vector<2x128xf32>
    %cst_67 = arith.constant 5.000000e-01 : f32
    %319 = vector.broadcast %cst_67 : f32 to vector<2x128xf32>
    %320 = arith.addf %318, %319 : vector<2x128xf32>
    %321 = math.tanh %313 : vector<2x128xf32>
    %322 = vector.extract_strided_slice %320 {offsets = [0, 0], sizes = [2, 32], strides = [1, 1]} : vector<2x128xf32> to vector<2x32xf32>
    %323 = vector.extract_strided_slice %320 {offsets = [0, 32], sizes = [2, 32], strides = [1, 1]} : vector<2x128xf32> to vector<2x32xf32>
    %324 = vector.extract_strided_slice %321 {offsets = [0, 64], sizes = [2, 32], strides = [1, 1]} : vector<2x128xf32> to vector<2x32xf32>
    %325 = vector.extract_strided_slice %320 {offsets = [0, 96], sizes = [2, 32], strides = [1, 1]} : vector<2x128xf32> to vector<2x32xf32>
    %326 = arith.mulf %323, %286 : vector<2x32xf32>
    %327 = arith.mulf %322, %324 : vector<2x32xf32>
    %328 = arith.addf %326, %327 : vector<2x32xf32>
    %329 = math.tanh %328 : vector<2x32xf32>
    %330 = arith.mulf %325, %329 : vector<2x32xf32>
    %331 = tpu.concatenate %330, %310 in 1 : vector<2x32xf32>, vector<2x32xf32> -> vector<2x64xf32>
    %332 = arith.truncf %331 : vector<2x64xf32> to vector<2x64xbf16>
    %cst_68 = arith.constant dense<0.000000e+00> : vector<2x256xf32>
    %333 = tpu.matmul %332, %14, %cst_68 {dimension_numbers = #tpu.dot_dimension_numbers<[1], [0], [0], [1], [0, 0, 1, 1], [], []>} : vector<2x64xbf16>, vector<64x256xbf16>, vector<2x256xf32> -> vector<2x256xf32>
    %334 = vector.extract_strided_slice %333 {offsets = [0, 128], sizes = [2, 128], strides = [1, 1]} : vector<2x256xf32> to vector<2x128xf32>
    %335 = arith.addf %334, %17 : vector<2x128xf32>
    %cst_69 = arith.constant 5.000000e-01 : f32
    %336 = vector.broadcast %cst_69 : f32 to vector<2x128xf32>
    %337 = arith.mulf %336, %335 : vector<2x128xf32>
    %338 = math.tanh %337 : vector<2x128xf32>
    %cst_70 = arith.constant 5.000000e-01 : f32
    %339 = vector.broadcast %cst_70 : f32 to vector<2x128xf32>
    %340 = arith.mulf %339, %338 : vector<2x128xf32>
    %cst_71 = arith.constant 5.000000e-01 : f32
    %341 = vector.broadcast %cst_71 : f32 to vector<2x128xf32>
    %342 = arith.addf %340, %341 : vector<2x128xf32>
    %343 = math.tanh %335 : vector<2x128xf32>
    %344 = vector.extract_strided_slice %342 {offsets = [0, 0], sizes = [2, 32], strides = [1, 1]} : vector<2x128xf32> to vector<2x32xf32>
    %345 = vector.extract_strided_slice %342 {offsets = [0, 32], sizes = [2, 32], strides = [1, 1]} : vector<2x128xf32> to vector<2x32xf32>
    %346 = vector.extract_strided_slice %343 {offsets = [0, 64], sizes = [2, 32], strides = [1, 1]} : vector<2x128xf32> to vector<2x32xf32>
    %347 = vector.extract_strided_slice %342 {offsets = [0, 96], sizes = [2, 32], strides = [1, 1]} : vector<2x128xf32> to vector<2x32xf32>
    %348 = arith.mulf %345, %308 : vector<2x32xf32>
    %349 = arith.mulf %344, %346 : vector<2x32xf32>
    %350 = arith.addf %348, %349 : vector<2x32xf32>
    %351 = math.tanh %350 : vector<2x32xf32>
    %352 = arith.mulf %347, %351 : vector<2x32xf32>
    %353 = arith.truncf %352 : vector<2x32xf32> to vector<2x32xbf16>
    %c0_72 = arith.constant 0 : index
    %c0_73 = arith.constant 0 : index
    %354 = vector.load %arg7[%c0_72, %c0_73] : memref<32x4xbf16, #tpu.memory_space<vmem>>, vector<32x4xbf16>
    %cst_74 = arith.constant dense<0.000000e+00> : vector<2x4xf32>
    %355 = tpu.matmul %353, %354, %cst_74 {dimension_numbers = #tpu.dot_dimension_numbers<[1], [0], [0], [1], [0, 0, 1, 1], [], []>} : vector<2x32xbf16>, vector<32x4xbf16>, vector<2x4xf32> -> vector<2x4xf32>
    %c0_75 = arith.constant 0 : index
    %c0_76 = arith.constant 0 : index
    %356 = vector.load %arg8[%c0_75, %c0_76] : memref<1x4xf32, #tpu.memory_space<vmem>>, vector<1x4xf32>
    %357 = vector.broadcast %356 : vector<1x4xf32> to vector<2x4xf32>
    %358 = arith.addf %355, %357 : vector<2x4xf32>
    %359 = math.tanh %358 : vector<2x4xf32>
    %cst_77 = arith.constant 1.000000e+00 : f32
    %360 = vector.broadcast %cst_77 : f32 to vector<2x4xf32>
    %361 = arith.mulf %359, %360 : vector<2x4xf32>
    %c0_78 = arith.constant 0 : index
    %c0_79 = arith.constant 0 : index
    %362 = vector.load %arg9[%c0_78, %c0_79] : memref<2x4xf32, #tpu.memory_space<vmem>>, vector<2x4xf32>
    tpu.vector_store %arg9[%c0_78, %c0_79], %361 {strides = array<i32>} : memref<2x4xf32, #tpu.memory_space<vmem>>, vector<2x4xf32>,
    return
  }
}

</mosaic_0001>

<bundles_post_ra>
// kernel: tpu_custom_call.1
= control target key start
LH: loop header
LB: loop body
LE: loop exit
PB: predicated region body
PF: predicated region fallthrough
CT: control target
= control target key end

     0   :  { %14 = vsyncpa [#allocation3], 0  ;;  %s1745_s0 = inlined_call_operand.vmem [shape: bf16[16,16], index: 0, kind: input, shape index: {}]   ;;  %s1746_s1 = inlined_call_operand.hbm [shape: bf16[16,32], index: 1, kind: input, shape index: {}]   ;;  %s1747_s2 = inlined_call_operand.vmem [shape: f32[1,32], index: 2, kind: input, shape index: {}]   ;;  %s1748_s3 = inlined_call_operand.vmem [shape: bf16[32,128], index: 3, kind: input, shape index: {}]   ;;  %s1749_s4 = inlined_call_operand.vmem [shape: f32[1,128], index: 4, kind: input, shape index: {}]   ;;  %s1750_s5 = inlined_call_operand.hbm [shape: bf16[64,256], index: 5, kind: input, shape index: {}]   ;;  %s1751_s6 = inlined_call_operand.vmem [shape: f32[1,128], index: 6, kind: input, shape index: {}]   ;;  %s1752_s7 = inlined_call_operand.vmem [shape: bf16[32,4], index: 7, kind: input, shape index: {}]   ;;  %s1753_s8 = inlined_call_operand.vmem [shape: f32[1,4], index: 8, kind: input, shape index: {}]   ;;  %s1754_s9 = inlined_call_operand.hbm [shape: f32[2,4], index: 9, kind: output, shape index: {}]  }
   0x1   :  { %15 = vsyncpa [#allocation6], 0 }
   0x2   :  { %16 = vsyncpa [#allocation4], 0  ;;  %s1411_s30 = smov [#allocation2]   ;;  %s1339_s13 = scalar_lea.hbm %s1746_s1, 128 }
   0x3   :  { %s24_s10 = sshll.u32 %s1411_s30, 4  ;;  %p1340_p0 = scmp.ne.s32.totalorder %s1746_s1, %s1339_s13  ;;  %s25_s10 = int_to_ptr.vmem [resolvable:$true] %s24_s10 }
   0x4   :  { %p1343_p1 = scmp.lt.u32.totalorder %s1339_s13, %s1746_s1 }
   0x6   :  { %p1345_p2 = pnand %p1343_p1, %p1340_p0 }
   0x8   :  { %1348 = shalt.err (!%p1345_p2)
}
   0x9   :  { %s1349_s18 = scalar_lea.vmem %s25_s10, 128  ;;  %p1354_p4 = scmp.lt.s32.totalorder %s25_s10, %s25_s10 }
   0xa   :  { %p1350_p3 = scmp.ne.s32.totalorder %s25_s10, %s1349_s18  ;;  %p1355_p5 = scmp.lt.s32.totalorder %s1349_s18, %s1349_s18 }
   0xc   :  { %p1356_p6 = por %p1355_p5, %p1354_p4 }
   0xe   :  { %p1357_p7 = pnand %p1356_p6, %p1350_p3 }
  0x10   :  { %1360 = shalt.err (!%p1357_p7)
}
  0x11   :  { %s1412_s19 = smov 64   ;;  %s1413_s20 = smov 4  }
  0x12   :  { %30 = dma.hbm_to_vmem [thread:$0]  %s1746_s1, 128, %s25_s10, [#allocation3], %s1412_s19, %s1412_s19, %s1413_s20  }
  0x13   :  { %s1414_s23 = smov [#allocation5]   ;;  %s1361_s27 = scalar_lea.hbm %s1750_s5, 1024 }
  0x14   :  { %s42_s24 = sshll.u32 %s1414_s23, 4  ;;  %p1362_p8 = scmp.ne.s32.totalorder %s1750_s5, %s1361_s27  ;;  %s43_s24 = int_to_ptr.vmem [resolvable:$true] %s42_s24 }
  0x15   :  { %p1365_p9 = scmp.lt.u32.totalorder %s1361_s27, %s1750_s5 }
  0x17   :  { %p1367_p10 = pnand %p1365_p9, %p1362_p8 }
  0x19   :  { %1370 = shalt.err (!%p1367_p10)
}
  0x1a   :  { %s1371_s12 = scalar_lea.vmem %s43_s24, 1024  ;;  %p1376_p12 = scmp.lt.s32.totalorder %s43_s24, %s43_s24 }
  0x1b   :  { %p1372_p11 = scmp.ne.s32.totalorder %s43_s24, %s1371_s12  ;;  %p1377_p13 = scmp.lt.s32.totalorder %s1371_s12, %s1371_s12 }
  0x1d   :  { %p1378_p0 = por %p1377_p13, %p1376_p12 }
  0x1f   :  { %p1379_p1 = pnand %p1378_p0, %p1372_p11 }
  0x21   :  { %1382 = shalt.err (!%p1379_p1)
}
  0x22   :  { %s1415_s1 = smov 128   ;;  %s1416_s10 = smov 8  }
  0x23   :  { %48 = dma.hbm_to_vmem [thread:$0]  %s1750_s5, 1024, %s43_s24, [#allocation6], %s1415_s1, %s1415_s1, %s1416_s10  }
  0x24   :  { %1405 = dma.done.wait [#allocation3], 128  }
  0x25   :  { %1406 = vsyncadd [#allocation3], 4294967168 }
  0x26   :  { %1407 = dma.done.wait [#allocation6], 1024  }
  0x27   :  { %1408 = vsyncadd [#allocation6], 4294966272  ;;  %v1417_v0 = vmov 0.0   ;;  %vm1418_vm0 = vmmov 0   ;;  %v1223_v1 = vld [vmem:[#allocation2] sm:$0xff]   ;;  %vm84_vm1 = vcmask 130048  }
  0x28   :  { %1190 = vmatprep.subr.bf16.mxu0 %v1417_v0  ;;  %1192 = vmatprep.mubr.msk.bf16.mxu0 %vm1418_vm0, %v1417_v0  ;;  %v1224_v2 = vld [vmem:[%s1745_s0] sm:$0xff]   ;;  %v1226_v4 = vld [vmem:[%s1748_s3 + $0x8] sm:$0xff]   ;;  %vm155_vm2 = vcmask 261120   ;;  %v1420_v41 = vmov 0   ;;  %vm283_vm3 = vcmask 523264   ;;  %vm1135_vm4 = vcmask 25600  }
  0x29   :  { %1196 = vmatprep.subr.bf16.mxu1 %v1417_v0  ;;  %1200 = vmatprep.mubr.msk.bf16.mxu1 %vm1418_vm0, %v1417_v0  ;;  %v1225_v3 = vld [vmem:[%s1748_s3] sm:$0xff]   ;;  %v1532_v32 = vld [vmem:[#allocation5 + $0x4] ss:$8 sps:$4 sm:$0xff]   ;;  %v1534_v33 = vld [vmem:[#allocation5] ss:$8 sps:$4 sm:$0xff]  }
  0x2a   :  { %1191 = vmatpush3.bf16.msra.mxu0 %v1223_v1  ;;  %1197 = vmatpush3.bf16.msra.mxu1 %v1225_v3  ;;  %v1153_v5 = vld [vmem:[%s1747_s2] ss:$0 sm:$0xff]  ;;  %s1419_s2 = smov 32   ;;  %v1536_v34 = vld [vmem:[#allocation5 + $0x14] ss:$8 sps:$4 sm:$0xff]  }
  0x2b   :  { %1198 = vmatprep.subr.bf16.mxu1 %v1417_v0  ;;  %v1157_v15 = vld [vmem:[%s1749_s4] ss:$0 sm:$0xff]  ;;  %287 = vmatprep.subr.bf16.mxu0 %v1532_v32  ;;  %v1545_v36 = vld [vmem:[#allocation5 + $0x24] ss:$8 sps:$4 sm:$0xff]   ;;  %v1549_v37 = vld [vmem:[#allocation5 + $0x20] ss:$8 sps:$4 sm:$0xff]  }
  0x2c   :  { %v1541_v35 = vld [vmem:[#allocation5 + $0x10] ss:$8 sps:$4 sm:$0xff]   ;;  %v1553_v38 = vld [vmem:[#allocation5 + $0x34] ss:$8 sps:$4 sm:$0xff]  }
  0x2d   :  { %1193 = vmatmul.mubr.msk.bf16.vlgmr.msra.gmra.mrb[0].mxu0 %vm84_vm1, %v1224_v2  ;;  %v1561_v40 = vld [vmem:[#allocation5 + $0x30] ss:$8 sps:$4 sm:$0xff]  }
  0x2e   :  { %1199 = vmatpush3.bf16.msra.mxu1 %v1226_v4  ;;  %288 = vmatpush1.bf16.msra.mxu0 %v1534_v33  ;;  %v1585_v48 = vld [vmem:[%s1751_s6] ss:$0 sm:$0xff] }
  0x2f   :  { %390 = vmatprep.subr.bf16.mxu1 %v1532_v32  ;;  %289 = vmatprep.subr.bf16.mxu0 %v1536_v34 }
  0x30   :  { %319 = vmatprep.mubr.bf16.mxu0 %v1420_v41 }
  0x32   :  { %290 = vmatpush1.bf16.msra.mxu0 %v1541_v35 }
  0x33   :  { %291 = vmatprep.subr.bf16.mxu0 %v1545_v36 }
  0x36   :  { %292 = vmatpush1.bf16.msra.mxu0 %v1549_v37 }
  0x37   :  { %293 = vmatprep.subr.bf16.mxu0 %v1553_v38 }
  0x3a   :  { %294 = vmatpush1.bf16.msra.mxu0 %v1561_v40 }
  0x3b   :  { %492 = vmatprep.subr.bf16.mxu0 %v1532_v32 }
 0x100   :  { %v122_v6 = vpop.f32.mrb[0].mxu0 }
 0x101   :  { %v123_v7 = vadd.f32 %v1153_v5, %v122_v6  ;;  %v1194_v8 = vpop.f32.mrb[1].mxu0 }
 0x102   :  { %v125_v9 = vpop.f32.mrb[2].mxu0 }
 0x103   :  { %v126_v10 = vadd.f32 %v1153_v5, %v125_v9  ;;  %v1195_v11 = vpop.f32.mrb[3].mxu0  ;;  %v129_v12 = vmax.f32 %v123_v7, 0.0 }
 0x105   :  { %v130_v13 = vmax.f32 %v126_v10, 0.0 }
 0x107   :  { %v131_v14 = vpack.c.bf16 %v130_v13, %v129_v12 }
 0x109   :  { %1201 = vmatmul.mubr.msk.bf16.vlgmr.msra.gmra.mrb[0].mxu1 %vm155_vm2, %v131_v14 }
 0x10a   :  { %391 = vmatpush1.bf16.msra.mxu1 %v1534_v33  ;;  %422 = vmatprep.mubr.bf16.mxu1 %v1420_v41 }
 0x10b   :  { %392 = vmatprep.subr.bf16.mxu1 %v1536_v34 }
 0x10e   :  { %393 = vmatpush1.bf16.msra.mxu1 %v1541_v35 }
 0x10f   :  { %394 = vmatprep.subr.bf16.mxu1 %v1545_v36 }
 0x112   :  { %395 = vmatpush1.bf16.msra.mxu1 %v1549_v37 }
 0x113   :  { %396 = vmatprep.subr.bf16.mxu1 %v1553_v38 }
 0x116   :  { %397 = vmatpush1.bf16.msra.mxu1 %v1561_v40 }
 0x117   :  { %594 = vmatprep.subr.bf16.mxu1 %v1532_v32 }
 0x1dc   :  { %v193_v16 = vpop.f32.mrb[0].mxu1 }
 0x1dd   :  { %v1521_v17 = vadd.f32 %v1157_v15, %v193_v16  ;;  %v1202_v18 = vpop.f32.mrb[1].mxu1 }
 0x1de   :  { %v196_v19 = vpop.f32.mrb[2].mxu1 }
 0x1df   :  { %v1523_v20 = vadd.f32 %v1157_v15, %v196_v19  ;;  %v1203_v21 = vpop.f32.mrb[3].mxu1  ;;  %1241 = vtanh.f32 %v1521_v17  ;;  %v215_v23 = vmul.f32 0.5, %v1521_v17  ;;  %v352_v47 = vrot.slane %v1521_v17, 2 }
 0x1e1   :  { %1243 = vtanh.f32 %v215_v23 }
 0x1e9   :  { %v1242_v22 = vpop.eup %1241 }
 0x1ea   :  { %222 = vrot.lane.b32.xlu0 %v1242_v22, %s1412_s19 }
 0x1eb   :  { %v1244_v24 = vpop.eup %1243 }
 0x1ec   :  { %v217_v25 = vmul.f32 0.5, %v1244_v24  ;;  %v454_v24 = vrot.slane %v1521_v17, 4 }
 0x1ee   :  { %v218_v26 = vadd.f32 0.5, %v217_v25 }
 0x1f0   :  { %v220_v29 = vmul.f32 0.0, %v218_v26 }
 0x25c   :  { %v223_v27 = vpop.permute.xlu0 %222 }
 0x25d   :  { %v225_v28 = vmul.f32 %v223_v27, %v218_v26 }
 0x25f   :  { %227 = vrot.lane.b32.xlu0 %v225_v28, %s1419_s2 }
 0x2d1   :  { %v228_v30 = vpop.permute.xlu0 %227 }
 0x2d2   :  { %v1529_v31 = vadd.f32 %v228_v30, %v220_v29 }
 0x2d4   :  { %1245 = vtanh.f32 %v1529_v31 }
 0x2de   :  { %v1246_v39 = vpop.eup %1245 }
 0x2df   :  { %233 = vrot.lane.b32.xlu1 %v1246_v39, %s1412_s19 }
 0x351   :  { %v234_v42 = vpop.permute.xlu1 %233 }
 0x352   :  { %v236_v43 = vmul.f32 %v234_v42, %v218_v26 }
 0x354   :  { %238 = vrot.lane.b32.xlu1 %v236_v43, %s1419_s2 }
 0x3c6   :  { %v239_v44 = vpop.permute.xlu1 %238 }
 0x3c7   :  { %v241_v45 = vsel %vm155_vm2, %v239_v44, 0.0 }
 0x3c8   :  { %v242_v46 = vpack.c.bf16 %v241_v45, %v241_v45 }
 0x3ca   :  { %1170 = vmatmul.mubr.msk.bf16.vlgmr.msra.gmra.mrb[4].mxu0 %vm283_vm3, %v242_v46 }
 0x3cb   :  { %493 = vmatpush1.bf16.msra.mxu0 %v1534_v33  ;;  %524 = vmatprep.mubr.bf16.mxu0 %v1420_v41 }
 0x3cc   :  { %494 = vmatprep.subr.bf16.mxu0 %v1536_v34 }
 0x3cf   :  { %495 = vmatpush1.bf16.msra.mxu0 %v1541_v35 }
 0x3d0   :  { %496 = vmatprep.subr.bf16.mxu0 %v1545_v36 }
 0x3d3   :  { %497 = vmatpush1.bf16.msra.mxu0 %v1549_v37 }
 0x3d4   :  { %498 = vmatprep.subr.bf16.mxu0 %v1553_v38 }
 0x3d7   :  { %499 = vmatpush1.bf16.msra.mxu0 %v1561_v40 }
 0x3d8   :  { %694 = vmatprep.subr.bf16.mxu0 %v1532_v32 }
 0x49d   :  { %v321_v49 = vpop.f32.mrb[4].mxu0 }
 0x49e   :  { %v354_v50 = vadd.f32 %v352_v47, %v321_v49  ;;  %v323_v51 = vpop.f32.mrb[5].mxu0 }
 0x49f   :  { %v328_v52 = vadd.f32 %v1585_v48, %v323_v51  ;;  %v325_v53 = vpop.f32.mrb[6].mxu0 }
 0x4a0   :  { %1247 = vtanh.f32 %v354_v50  ;;  %v326_v54 = vpop.f32.mrb[7].mxu0  ;;  %v355_v57 = vmul.f32 0.5, %v354_v50 }
 0x4a1   :  { %1249 = vtanh.f32 %v328_v52  ;;  %v329_v58 = vmul.f32 0.5, %v328_v52 }
 0x4a2   :  { %1251 = vtanh.f32 %v355_v57 }
 0x4a3   :  { %1253 = vtanh.f32 %v329_v58 }
 0x4aa   :  { %v1248_v55 = vpop.eup %1247 }
 0x4ab   :  { %v1250_v56 = vpop.eup %1249  ;;  %362 = vrot.lane.b32.xlu1 %v1248_v55, %s1412_s19 }
 0x4ac   :  { %336 = vrot.lane.b32.xlu0 %v1250_v56, %s1412_s19  ;;  %v1252_v59 = vpop.eup %1251 }
 0x4ad   :  { %v1254_v60 = vpop.eup %1253  ;;  %v357_v61 = vmul.f32 0.5, %v1252_v59 }
 0x4ae   :  { %v331_v62 = vmul.f32 0.5, %v1254_v60 }
 0x4af   :  { %v358_v63 = vadd.f32 0.5, %v357_v61 }
 0x4b0   :  { %v332_v2 = vadd.f32 0.5, %v331_v62 }
 0x4b1   :  { %v360_v6 = vmul.f32 %v358_v63, %v1529_v31 }
 0x4b2   :  { %v334_v8 = vmul.f32 0.0, %v332_v2 }
 0x51d   :  { %v363_v1 = vpop.permute.xlu1 %362 }
 0x51e   :  { %v365_v3 = vmul.f32 %v363_v1, %v358_v63  ;;  %v337_v4 = vpop.permute.xlu0 %336 }
 0x51f   :  { %v339_v5 = vmul.f32 %v337_v4, %v332_v2 }
 0x520   :  { %367 = vrot.lane.b32.xlu1 %v365_v3, %s1419_s2 }
 0x521   :  { %341 = vrot.lane.b32.xlu0 %v339_v5, %s1419_s2 }
 0x592   :  { %v368_v7 = vpop.permute.xlu1 %367 }
 0x593   :  { %v370_v9 = vadd.f32 %v368_v7, %v360_v6  ;;  %v342_v10 = vpop.permute.xlu0 %341 }
 0x594   :  { %v344_v11 = vadd.f32 %v342_v10, %v334_v8  ;;  %v556_v8 = vrot.slane %v1521_v17, 6 }
 0x595   :  { %1255 = vtanh.f32 %v370_v9 }
 0x596   :  { %1257 = vtanh.f32 %v344_v11 }
 0x59f   :  { %v1256_v12 = vpop.eup %1255 }
 0x5a0   :  { %v1258_v13 = vpop.eup %1257  ;;  %373 = vrot.lane.b32.xlu1 %v1256_v12, %s1412_s19 }
 0x5a1   :  { %347 = vrot.lane.b32.xlu0 %v1258_v13, %s1412_s19 }
 0x612   :  { %v374_v14 = vpop.permute.xlu1 %373 }
 0x613   :  { %v376_v15 = vmul.f32 %v374_v14, %v358_v63  ;;  %v348_v16 = vpop.permute.xlu0 %347 }
 0x614   :  { %v350_v18 = vmul.f32 %v348_v16, %v332_v2 }
 0x615   :  { %378 = vrot.lane.b32.xlu0 %v376_v15, %s1419_s2 }
 0x616   :  { %382 = vrot.lane.b32.xlu1 %v350_v18, %s1412_s19 }
 0x687   :  { %v379_v19 = vpop.permute.xlu0 %378 }
 0x688   :  { %v383_v21 = vpop.permute.xlu1 %382 }
 0x689   :  { %v385_v22 = vsel %vm155_vm2, %v379_v19, %v383_v21 }
 0x68a   :  { %v386_v23 = vpack.c.bf16 %v385_v22, %v385_v22 }
 0x68c   :  { %1171 = vmatmul.mubr.msk.bf16.vlgmr.msra.gmra.mrb[4].mxu1 %vm283_vm3, %v386_v23 }
 0x68d   :  { %595 = vmatpush1.bf16.msra.mxu1 %v1534_v33  ;;  %626 = vmatprep.mubr.bf16.mxu1 %v1420_v41 }
 0x68e   :  { %596 = vmatprep.subr.bf16.mxu1 %v1536_v34 }
 0x691   :  { %597 = vmatpush1.bf16.msra.mxu1 %v1541_v35 }
 0x692   :  { %598 = vmatprep.subr.bf16.mxu1 %v1545_v36 }
 0x695   :  { %599 = vmatpush1.bf16.msra.mxu1 %v1549_v37 }
 0x696   :  { %600 = vmatprep.subr.bf16.mxu1 %v1553_v38 }
 0x699   :  { %601 = vmatpush1.bf16.msra.mxu1 %v1561_v40 }
 0x69a   :  { %797 = vmatprep.subr.bf16.mxu1 %v1532_v32 }
 0x75f   :  { %v424_v25 = vpop.f32.mrb[4].mxu1 }
 0x760   :  { %v456_v26 = vadd.f32 %v454_v24, %v424_v25  ;;  %v426_v27 = vpop.f32.mrb[5].mxu1 }
 0x761   :  { %v431_v28 = vadd.f32 %v1585_v48, %v426_v27  ;;  %v428_v29 = vpop.f32.mrb[6].mxu1 }
 0x762   :  { %1259 = vtanh.f32 %v456_v26  ;;  %v429_v30 = vpop.f32.mrb[7].mxu1  ;;  %v457_v42 = vmul.f32 0.5, %v456_v26 }
 0x763   :  { %1261 = vtanh.f32 %v431_v28  ;;  %v432_v43 = vmul.f32 0.5, %v431_v28 }
 0x764   :  { %1263 = vtanh.f32 %v457_v42 }
 0x765   :  { %1265 = vtanh.f32 %v432_v43 }
 0x76c   :  { %v1260_v31 = vpop.eup %1259 }
 0x76d   :  { %v1262_v39 = vpop.eup %1261  ;;  %464 = vrot.lane.b32.xlu1 %v1260_v31, %s1412_s19 }
 0x76e   :  { %439 = vrot.lane.b32.xlu0 %v1262_v39, %s1412_s19  ;;  %v1264_v44 = vpop.eup %1263 }
 0x76f   :  { %v1266_v45 = vpop.eup %1265  ;;  %v459_v46 = vmul.f32 0.5, %v1264_v44 }
 0x770   :  { %v434_v47 = vmul.f32 0.5, %v1266_v45 }
 0x771   :  { %v460_v49 = vadd.f32 0.5, %v459_v46 }
 0x772   :  { %v435_v51 = vadd.f32 0.5, %v434_v47 }
 0x773   :  { %v462_v55 = vmul.f32 %v460_v49, %v370_v9 }
 0x774   :  { %v437_v57 = vmul.f32 %v435_v51, %v344_v11 }
 0x7df   :  { %v465_v50 = vpop.permute.xlu1 %464 }
 0x7e0   :  { %v467_v52 = vmul.f32 %v465_v50, %v460_v49  ;;  %v440_v53 = vpop.permute.xlu0 %439 }
 0x7e1   :  { %v442_v54 = vmul.f32 %v440_v53, %v435_v51 }
 0x7e2   :  { %469 = vrot.lane.b32.xlu1 %v467_v52, %s1419_s2 }
 0x7e3   :  { %444 = vrot.lane.b32.xlu0 %v442_v54, %s1419_s2 }
 0x854   :  { %v470_v56 = vpop.permute.xlu1 %469 }
 0x855   :  { %v472_v58 = vadd.f32 %v470_v56, %v462_v55  ;;  %v445_v59 = vpop.permute.xlu0 %444 }
 0x856   :  { %v447_v60 = vadd.f32 %v445_v59, %v437_v57 }
 0x857   :  { %1267 = vtanh.f32 %v472_v58 }
 0x858   :  { %1269 = vtanh.f32 %v447_v60 }
 0x861   :  { %v1268_v61 = vpop.eup %1267 }
 0x862   :  { %v1270_v62 = vpop.eup %1269  ;;  %475 = vrot.lane.b32.xlu1 %v1268_v61, %s1412_s19 }
 0x863   :  { %450 = vrot.lane.b32.xlu0 %v1270_v62, %s1412_s19 }
 0x8d4   :  { %v476_v63 = vpop.permute.xlu1 %475 }
 0x8d5   :  { %v478_v1 = vmul.f32 %v476_v63, %v460_v49  ;;  %v451_v2 = vpop.permute.xlu0 %450 }
 0x8d6   :  { %v453_v3 = vmul.f32 %v451_v2, %v435_v51 }
 0x8d7   :  { %480 = vrot.lane.b32.xlu0 %v478_v1, %s1419_s2 }
 0x8d8   :  { %484 = vrot.lane.b32.xlu1 %v453_v3, %s1412_s19 }
 0x949   :  { %v481_v4 = vpop.permute.xlu0 %480 }
 0x94a   :  { %v485_v5 = vpop.permute.xlu1 %484 }
 0x94b   :  { %v487_v6 = vsel %vm155_vm2, %v481_v4, %v485_v5 }
 0x94c   :  { %v488_v7 = vpack.c.bf16 %v487_v6, %v487_v6 }
 0x94e   :  { %1172 = vmatmul.mubr.msk.bf16.vlgmr.msra.gmra.mrb[8].mxu0 %vm283_vm3, %v488_v7 }
 0x94f   :  { %695 = vmatpush1.bf16.msra.mxu0 %v1534_v33  ;;  %726 = vmatprep.mubr.bf16.mxu0 %v1420_v41 }
 0x950   :  { %696 = vmatprep.subr.bf16.mxu0 %v1536_v34 }
 0x953   :  { %697 = vmatpush1.bf16.msra.mxu0 %v1541_v35 }
 0x954   :  { %698 = vmatprep.subr.bf16.mxu0 %v1545_v36 }
 0x957   :  { %699 = vmatpush1.bf16.msra.mxu0 %v1549_v37 }
 0x958   :  { %700 = vmatprep.subr.bf16.mxu0 %v1553_v38 }
 0x95b   :  { %701 = vmatpush1.bf16.msra.mxu0 %v1561_v40 }
 0x95c   :  { %899 = vmatprep.subr.bf16.mxu0 %v1532_v32 }
 0xa21   :  { %v526_v9 = vpop.f32.mrb[8].mxu0 }
 0xa22   :  { %v558_v10 = vadd.f32 %v556_v8, %v526_v9  ;;  %v528_v11 = vpop.f32.mrb[9].mxu0 }
 0xa23   :  { %v533_v12 = vadd.f32 %v1585_v48, %v528_v11  ;;  %v530_v13 = vpop.f32.mrb[10].mxu0 }
 0xa24   :  { %1271 = vtanh.f32 %v558_v10  ;;  %v531_v14 = vpop.f32.mrb[11].mxu0  ;;  %v559_v18 = vmul.f32 0.5, %v558_v10 }
 0xa25   :  { %1273 = vtanh.f32 %v533_v12  ;;  %v534_v19 = vmul.f32 0.5, %v533_v12 }
 0xa26   :  { %1275 = vtanh.f32 %v559_v18 }
 0xa27   :  { %1277 = vtanh.f32 %v534_v19 }
 0xa2e   :  { %v1272_v15 = vpop.eup %1271 }
 0xa2f   :  { %v1274_v16 = vpop.eup %1273  ;;  %566 = vrot.lane.b32.xlu1 %v1272_v15, %s1412_s19 }
 0xa30   :  { %541 = vrot.lane.b32.xlu0 %v1274_v16, %s1412_s19  ;;  %v1276_v17 = vpop.eup %1275 }
 0xa31   :  { %v1278_v21 = vpop.eup %1277  ;;  %v561_v22 = vmul.f32 0.5, %v1276_v17 }
 0xa32   :  { %v536_v23 = vmul.f32 0.5, %v1278_v21 }
 0xa33   :  { %v562_v24 = vadd.f32 0.5, %v561_v22 }
 0xa34   :  { %v537_v26 = vadd.f32 0.5, %v536_v23 }
 0xa35   :  { %v564_v30 = vmul.f32 %v562_v24, %v472_v58 }
 0xa36   :  { %v539_v39 = vmul.f32 %v537_v26, %v447_v60 }
 0xaa1   :  { %v567_v25 = vpop.permute.xlu1 %566 }
 0xaa2   :  { %v569_v27 = vmul.f32 %v567_v25, %v562_v24  ;;  %v542_v28 = vpop.permute.xlu0 %541 }
 0xaa3   :  { %v544_v29 = vmul.f32 %v542_v28, %v537_v26 }
 0xaa4   :  { %571 = vrot.lane.b32.xlu1 %v569_v27, %s1419_s2 }
 0xaa5   :  { %546 = vrot.lane.b32.xlu0 %v544_v29, %s1419_s2  ;;  %v759_v29 = vrot.slane %v1523_v20, 2 }
 0xb16   :  { %v572_v31 = vpop.permute.xlu1 %571 }
 0xb17   :  { %v574_v42 = vadd.f32 %v572_v31, %v564_v30  ;;  %v547_v43 = vpop.permute.xlu0 %546 }
 0xb18   :  { %v549_v44 = vadd.f32 %v547_v43, %v539_v39 }
 0xb19   :  { %1279 = vtanh.f32 %v574_v42 }
 0xb1a   :  { %1281 = vtanh.f32 %v549_v44 }
 0xb23   :  { %v1280_v45 = vpop.eup %1279 }
 0xb24   :  { %v1282_v46 = vpop.eup %1281  ;;  %577 = vrot.lane.b32.xlu1 %v1280_v45, %s1412_s19 }
 0xb25   :  { %552 = vrot.lane.b32.xlu0 %v1282_v46, %s1412_s19 }
 0xb96   :  { %v578_v47 = vpop.permute.xlu1 %577 }
 0xb97   :  { %v580_v49 = vmul.f32 %v578_v47, %v562_v24  ;;  %v553_v50 = vpop.permute.xlu0 %552 }
 0xb98   :  { %v555_v51 = vmul.f32 %v553_v50, %v537_v26 }
 0xb99   :  { %582 = vrot.lane.b32.xlu0 %v580_v49, %s1419_s2 }
 0xb9a   :  { %586 = vrot.lane.b32.xlu1 %v555_v51, %s1412_s19 }
 0xc0b   :  { %v583_v52 = vpop.permute.xlu0 %582 }
 0xc0c   :  { %v587_v53 = vpop.permute.xlu1 %586 }
 0xc0d   :  { %v589_v54 = vsel %vm155_vm2, %v583_v52, %v587_v53 }
 0xc0e   :  { %v590_v55 = vpack.c.bf16 %v589_v54, %v589_v54 }
 0xc10   :  { %1173 = vmatmul.mubr.msk.bf16.vlgmr.msra.gmra.mrb[8].mxu1 %vm283_vm3, %v590_v55 }
 0xc11   :  { %798 = vmatpush1.bf16.msra.mxu1 %v1534_v33  ;;  %829 = vmatprep.mubr.bf16.mxu1 %v1420_v41 }
 0xc12   :  { %799 = vmatprep.subr.bf16.mxu1 %v1536_v34 }
 0xc15   :  { %800 = vmatpush1.bf16.msra.mxu1 %v1541_v35 }
 0xc16   :  { %801 = vmatprep.subr.bf16.mxu1 %v1545_v36 }
 0xc19   :  { %802 = vmatpush1.bf16.msra.mxu1 %v1549_v37 }
 0xc1a   :  { %803 = vmatprep.subr.bf16.mxu1 %v1553_v38 }
 0xc1d   :  { %804 = vmatpush1.bf16.msra.mxu1 %v1561_v40 }
 0xc1e   :  { %1001 = vmatprep.subr.bf16.mxu1 %v1532_v32 }
 0xce3   :  { %v628_v56 = vpop.f32.mrb[8].mxu1 }
 0xce4   :  { %v658_v57 = vadd.f32 %v628_v56, %v1523_v20  ;;  %v630_v58 = vpop.f32.mrb[9].mxu1 }
 0xce5   :  { %v635_v59 = vadd.f32 %v1585_v48, %v630_v58  ;;  %v632_v60 = vpop.f32.mrb[10].mxu1 }
 0xce6   :  { %1283 = vtanh.f32 %v658_v57  ;;  %v633_v61 = vpop.f32.mrb[11].mxu1  ;;  %v659_v1 = vmul.f32 0.5, %v658_v57 }
 0xce7   :  { %1285 = vtanh.f32 %v635_v59  ;;  %v636_v2 = vmul.f32 0.5, %v635_v59 }
 0xce8   :  { %1287 = vtanh.f32 %v659_v1 }
 0xce9   :  { %1289 = vtanh.f32 %v636_v2 }
 0xcf0   :  { %v1284_v62 = vpop.eup %1283 }
 0xcf1   :  { %v1286_v63 = vpop.eup %1285  ;;  %666 = vrot.lane.b32.xlu1 %v1284_v62, %s1412_s19 }
 0xcf2   :  { %643 = vrot.lane.b32.xlu0 %v1286_v63, %s1412_s19  ;;  %v1288_v32 = vpop.eup %1287 }
 0xcf3   :  { %v1290_v3 = vpop.eup %1289  ;;  %v661_v4 = vmul.f32 0.5, %v1288_v32 }
 0xcf4   :  { %v638_v5 = vmul.f32 0.5, %v1290_v3 }
 0xcf5   :  { %v662_v6 = vadd.f32 0.5, %v661_v4 }
 0xcf6   :  { %v639_v8 = vadd.f32 0.5, %v638_v5 }
 0xcf7   :  { %v664_v12 = vmul.f32 %v662_v6, %v574_v42 }
 0xcf8   :  { %v641_v14 = vmul.f32 %v639_v8, %v549_v44 }
 0xd63   :  { %v667_v7 = vpop.permute.xlu1 %666 }
 0xd64   :  { %v669_v9 = vmul.f32 %v667_v7, %v662_v6  ;;  %v644_v10 = vpop.permute.xlu0 %643 }
 0xd65   :  { %v646_v11 = vmul.f32 %v644_v10, %v639_v8 }
 0xd66   :  { %671 = vrot.lane.b32.xlu1 %v669_v9, %s1419_s2 }
 0xd67   :  { %648 = vrot.lane.b32.xlu0 %v646_v11, %s1419_s2 }
 0xdd8   :  { %v672_v13 = vpop.permute.xlu1 %671 }
 0xdd9   :  { %v674_v15 = vadd.f32 %v672_v13, %v664_v12  ;;  %v649_v16 = vpop.permute.xlu0 %648  ;;  %v861_v12 = vrot.slane %v1523_v20, 4 }
 0xdda   :  { %v651_v18 = vadd.f32 %v649_v16, %v641_v14 }
 0xddb   :  { %1291 = vtanh.f32 %v674_v15 }
 0xddc   :  { %1293 = vtanh.f32 %v651_v18 }
 0xde5   :  { %v1292_v19 = vpop.eup %1291 }
 0xde6   :  { %v1294_v17 = vpop.eup %1293  ;;  %677 = vrot.lane.b32.xlu1 %v1292_v19, %s1412_s19 }
 0xde7   :  { %654 = vrot.lane.b32.xlu0 %v1294_v17, %s1412_s19 }
 0xe58   :  { %v678_v21 = vpop.permute.xlu1 %677 }
 0xe59   :  { %v680_v22 = vmul.f32 %v678_v21, %v662_v6  ;;  %v655_v23 = vpop.permute.xlu0 %654 }
 0xe5a   :  { %v657_v24 = vmul.f32 %v655_v23, %v639_v8 }
 0xe5b   :  { %682 = vrot.lane.b32.xlu0 %v680_v22, %s1419_s2 }
 0xe5c   :  { %686 = vrot.lane.b32.xlu1 %v657_v24, %s1412_s19 }
 0xecd   :  { %v683_v25 = vpop.permute.xlu0 %682 }
 0xece   :  { %v687_v26 = vpop.permute.xlu1 %686 }
 0xecf   :  { %v689_v27 = vsel %vm155_vm2, %v683_v25, %v687_v26 }
 0xed0   :  { %v690_v28 = vpack.c.bf16 %v689_v27, %v689_v27 }
 0xed2   :  { %1174 = vmatmul.mubr.msk.bf16.vlgmr.msra.gmra.mrb[12].mxu0 %vm283_vm3, %v690_v28 }
 0xed3   :  { %900 = vmatpush1.bf16.msra.mxu0 %v1534_v33  ;;  %931 = vmatprep.mubr.bf16.mxu0 %v1420_v41 }
 0xed4   :  { %901 = vmatprep.subr.bf16.mxu0 %v1536_v34 }
 0xed7   :  { %902 = vmatpush1.bf16.msra.mxu0 %v1541_v35 }
 0xed8   :  { %903 = vmatprep.subr.bf16.mxu0 %v1545_v36 }
 0xedb   :  { %904 = vmatpush1.bf16.msra.mxu0 %v1549_v37 }
 0xedc   :  { %905 = vmatprep.subr.bf16.mxu0 %v1553_v38 }
 0xedf   :  { %906 = vmatpush1.bf16.msra.mxu0 %v1561_v40 }
 0xee0   :  { %1204 = vmatprep.subr.bf16.mxu0 %v1417_v0 }
 0xfa5   :  { %v728_v30 = vpop.f32.mrb[12].mxu0 }
 0xfa6   :  { %v761_v31 = vadd.f32 %v759_v29, %v728_v30  ;;  %v730_v39 = vpop.f32.mrb[13].mxu0 }
 0xfa7   :  { %v735_v42 = vadd.f32 %v1585_v48, %v730_v39  ;;  %v732_v43 = vpop.f32.mrb[14].mxu0 }
 0xfa8   :  { %1295 = vtanh.f32 %v761_v31  ;;  %v733_v44 = vpop.f32.mrb[15].mxu0  ;;  %v762_v47 = vmul.f32 0.5, %v761_v31 }
 0xfa9   :  { %1297 = vtanh.f32 %v735_v42  ;;  %v736_v49 = vmul.f32 0.5, %v735_v42 }
 0xfaa   :  { %1299 = vtanh.f32 %v762_v47 }
 0xfab   :  { %1301 = vtanh.f32 %v736_v49 }
 0xfb2   :  { %v1296_v45 = vpop.eup %1295 }
 0xfb3   :  { %v1298_v46 = vpop.eup %1297  ;;  %769 = vrot.lane.b32.xlu1 %v1296_v45, %s1412_s19 }
 0xfb4   :  { %743 = vrot.lane.b32.xlu0 %v1298_v46, %s1412_s19  ;;  %v1300_v50 = vpop.eup %1299 }
 0xfb5   :  { %v1302_v51 = vpop.eup %1301  ;;  %v764_v52 = vmul.f32 0.5, %v1300_v50 }
 0xfb6   :  { %v738_v53 = vmul.f32 0.5, %v1302_v51 }
 0xfb7   :  { %v765_v54 = vadd.f32 0.5, %v764_v52  ;;  %v963_v52 = vrot.slane %v1523_v20, 6 }
 0xfb8   :  { %v739_v56 = vadd.f32 0.5, %v738_v53 }
 0xfb9   :  { %v767_v60 = vmul.f32 %v765_v54, %v674_v15 }
 0xfba   :  { %v741_v62 = vmul.f32 %v739_v56, %v651_v18 }
0x1025   :  { %v770_v55 = vpop.permute.xlu1 %769 }
0x1026   :  { %v772_v57 = vmul.f32 %v770_v55, %v765_v54  ;;  %v744_v58 = vpop.permute.xlu0 %743 }
0x1027   :  { %v746_v59 = vmul.f32 %v744_v58, %v739_v56 }
0x1028   :  { %774 = vrot.lane.b32.xlu1 %v772_v57, %s1419_s2 }
0x1029   :  { %748 = vrot.lane.b32.xlu0 %v746_v59, %s1419_s2 }
0x109a   :  { %v775_v61 = vpop.permute.xlu1 %774 }
0x109b   :  { %v777_v63 = vadd.f32 %v775_v61, %v767_v60  ;;  %v749_v1 = vpop.permute.xlu0 %748 }
0x109c   :  { %v751_v2 = vadd.f32 %v749_v1, %v741_v62 }
0x109d   :  { %1303 = vtanh.f32 %v777_v63 }
0x109e   :  { %1305 = vtanh.f32 %v751_v2 }
0x10a7   :  { %v1304_v32 = vpop.eup %1303 }
0x10a8   :  { %v1306_v3 = vpop.eup %1305  ;;  %780 = vrot.lane.b32.xlu1 %v1304_v32, %s1412_s19 }
0x10a9   :  { %754 = vrot.lane.b32.xlu0 %v1306_v3, %s1412_s19 }
0x111a   :  { %v781_v4 = vpop.permute.xlu1 %780 }
0x111b   :  { %v783_v5 = vmul.f32 %v781_v4, %v765_v54  ;;  %v755_v6 = vpop.permute.xlu0 %754 }
0x111c   :  { %v757_v7 = vmul.f32 %v755_v6, %v739_v56 }
0x111d   :  { %785 = vrot.lane.b32.xlu0 %v783_v5, %s1419_s2 }
0x111e   :  { %789 = vrot.lane.b32.xlu1 %v757_v7, %s1412_s19 }
0x118f   :  { %v786_v8 = vpop.permute.xlu0 %785 }
0x1190   :  { %v790_v9 = vpop.permute.xlu1 %789 }
0x1191   :  { %v792_v10 = vsel %vm155_vm2, %v786_v8, %v790_v9 }
0x1192   :  { %v793_v11 = vpack.c.bf16 %v792_v10, %v792_v10 }
0x1194   :  { %1175 = vmatmul.mubr.msk.bf16.vlgmr.msra.gmra.mrb[12].mxu1 %vm283_vm3, %v793_v11 }
0x1195   :  { %1002 = vmatpush1.bf16.msra.mxu1 %v1534_v33  ;;  %1033 = vmatprep.mubr.bf16.mxu1 %v1420_v41 }
0x1196   :  { %1003 = vmatprep.subr.bf16.mxu1 %v1536_v34 }
0x1199   :  { %1004 = vmatpush1.bf16.msra.mxu1 %v1541_v35 }
0x119a   :  { %1005 = vmatprep.subr.bf16.mxu1 %v1545_v36 }
0x119d   :  { %1006 = vmatpush1.bf16.msra.mxu1 %v1549_v37 }
0x119e   :  { %1007 = vmatprep.subr.bf16.mxu1 %v1553_v38 }
0x11a1   :  { %1008 = vmatpush1.bf16.msra.mxu1 %v1561_v40 }
0x1267   :  { %v831_v13 = vpop.f32.mrb[12].mxu1 }
0x1268   :  { %v863_v14 = vadd.f32 %v861_v12, %v831_v13  ;;  %v833_v15 = vpop.f32.mrb[13].mxu1 }
0x1269   :  { %v838_v33 = vadd.f32 %v1585_v48, %v833_v15  ;;  %v835_v41 = vpop.f32.mrb[14].mxu1 }
0x126a   :  { %1307 = vtanh.f32 %v863_v14  ;;  %v836_v34 = vpop.f32.mrb[15].mxu1  ;;  %v864_v36 = vmul.f32 0.5, %v863_v14 }
0x126b   :  { %1309 = vtanh.f32 %v838_v33  ;;  %v839_v37 = vmul.f32 0.5, %v838_v33 }
0x126c   :  { %1311 = vtanh.f32 %v864_v36 }
0x126d   :  { %1313 = vtanh.f32 %v839_v37 }
0x1274   :  { %v1308_v35 = vpop.eup %1307 }
0x1275   :  { %v1310_v16 = vpop.eup %1309  ;;  %871 = vrot.lane.b32.xlu1 %v1308_v35, %s1412_s19 }
0x1276   :  { %846 = vrot.lane.b32.xlu0 %v1310_v16, %s1412_s19  ;;  %v1312_v38 = vpop.eup %1311 }
0x1277   :  { %v1314_v40 = vpop.eup %1313  ;;  %v866_v18 = vmul.f32 0.5, %v1312_v38 }
0x1278   :  { %v841_v19 = vmul.f32 0.5, %v1314_v40 }
0x1279   :  { %v867_v17 = vadd.f32 0.5, %v866_v18 }
0x127a   :  { %v842_v22 = vadd.f32 0.5, %v841_v19 }
0x127b   :  { %v869_v26 = vmul.f32 %v867_v17, %v777_v63 }
0x127c   :  { %v844_v28 = vmul.f32 %v842_v22, %v751_v2 }
0x12e7   :  { %v872_v21 = vpop.permute.xlu1 %871 }
0x12e8   :  { %v874_v23 = vmul.f32 %v872_v21, %v867_v17  ;;  %v847_v24 = vpop.permute.xlu0 %846 }
0x12e9   :  { %v849_v25 = vmul.f32 %v847_v24, %v842_v22 }
0x12ea   :  { %876 = vrot.lane.b32.xlu1 %v874_v23, %s1419_s2 }
0x12eb   :  { %851 = vrot.lane.b32.xlu0 %v849_v25, %s1419_s2 }
0x135c   :  { %v877_v27 = vpop.permute.xlu1 %876 }
0x135d   :  { %v879_v29 = vadd.f32 %v877_v27, %v869_v26  ;;  %v852_v30 = vpop.permute.xlu0 %851 }
0x135e   :  { %v854_v31 = vadd.f32 %v852_v30, %v844_v28 }
0x135f   :  { %1315 = vtanh.f32 %v879_v29 }
0x1360   :  { %1317 = vtanh.f32 %v854_v31 }
0x1369   :  { %v1316_v39 = vpop.eup %1315 }
0x136a   :  { %v1318_v42 = vpop.eup %1317  ;;  %882 = vrot.lane.b32.xlu1 %v1316_v39, %s1412_s19  ;;  %v1240_v39 = vld [vmem:[%s1752_s7 + $0x8] sm:$0xff]  }
0x136b   :  { %857 = vrot.lane.b32.xlu0 %v1318_v42, %s1412_s19 }
0x13dc   :  { %v883_v43 = vpop.permute.xlu1 %882 }
0x13dd   :  { %v885_v44 = vmul.f32 %v883_v43, %v867_v17  ;;  %v858_v45 = vpop.permute.xlu0 %857 }
0x13de   :  { %v860_v46 = vmul.f32 %v858_v45, %v842_v22 }
0x13df   :  { %887 = vrot.lane.b32.xlu0 %v885_v44, %s1419_s2 }
0x13e0   :  { %891 = vrot.lane.b32.xlu1 %v860_v46, %s1412_s19 }
0x1451   :  { %v888_v47 = vpop.permute.xlu0 %887 }
0x1452   :  { %v892_v49 = vpop.permute.xlu1 %891 }
0x1453   :  { %v894_v50 = vsel %vm155_vm2, %v888_v47, %v892_v49  ;;  %v1178_v47 = vld [vmem:[%s1753_s8] ss:$0 sm:$0xff] }
0x1454   :  { %v895_v51 = vpack.c.bf16 %v894_v50, %v894_v50 }
0x1456   :  { %1176 = vmatmul.mubr.msk.bf16.vlgmr.msra.gmra.mrb[16].mxu0 %vm283_vm3, %v895_v51 }
0x1457   :  { %1208 = vmatprep.mubr.msk.bf16.mxu0 %vm1418_vm0, %v1417_v0 }
0x1529   :  { %v933_v53 = vpop.f32.mrb[16].mxu0 }
0x152a   :  { %v965_v54 = vadd.f32 %v963_v52, %v933_v53  ;;  %v935_v55 = vpop.f32.mrb[17].mxu0 }
0x152b   :  { %v940_v56 = vadd.f32 %v1585_v48, %v935_v55  ;;  %v937_v57 = vpop.f32.mrb[18].mxu0 }
0x152c   :  { %1319 = vtanh.f32 %v965_v54  ;;  %v938_v58 = vpop.f32.mrb[19].mxu0  ;;  %v966_v61 = vmul.f32 0.5, %v965_v54 }
0x152d   :  { %1321 = vtanh.f32 %v940_v56  ;;  %v941_v62 = vmul.f32 0.5, %v940_v56 }
0x152e   :  { %1323 = vtanh.f32 %v966_v61 }
0x152f   :  { %1325 = vtanh.f32 %v941_v62 }
0x1536   :  { %v1320_v59 = vpop.eup %1319 }
0x1537   :  { %v1322_v60 = vpop.eup %1321  ;;  %973 = vrot.lane.b32.xlu1 %v1320_v59, %s1412_s19 }
0x1538   :  { %948 = vrot.lane.b32.xlu0 %v1322_v60, %s1412_s19  ;;  %v1324_v20 = vpop.eup %1323 }
0x1539   :  { %v1326_v63 = vpop.eup %1325  ;;  %v968_v1 = vmul.f32 0.5, %v1324_v20 }
0x153a   :  { %v943_v2 = vmul.f32 0.5, %v1326_v63 }
0x153b   :  { %v969_v32 = vadd.f32 0.5, %v968_v1 }
0x153c   :  { %v944_v4 = vadd.f32 0.5, %v943_v2 }
0x153d   :  { %v971_v8 = vmul.f32 %v969_v32, %v879_v29 }
0x153e   :  { %v946_v10 = vmul.f32 %v944_v4, %v854_v31 }
0x15a9   :  { %v974_v3 = vpop.permute.xlu1 %973 }
0x15aa   :  { %v976_v5 = vmul.f32 %v974_v3, %v969_v32  ;;  %v949_v6 = vpop.permute.xlu0 %948 }
0x15ab   :  { %v951_v7 = vmul.f32 %v949_v6, %v944_v4 }
0x15ac   :  { %978 = vrot.lane.b32.xlu1 %v976_v5, %s1419_s2 }
0x15ad   :  { %953 = vrot.lane.b32.xlu0 %v951_v7, %s1419_s2 }
0x161e   :  { %v979_v9 = vpop.permute.xlu1 %978 }
0x161f   :  { %v981_v11 = vadd.f32 %v979_v9, %v971_v8  ;;  %v954_v12 = vpop.permute.xlu0 %953 }
0x1620   :  { %v956_v13 = vadd.f32 %v954_v12, %v946_v10 }
0x1621   :  { %1327 = vtanh.f32 %v981_v11 }
0x1622   :  { %1329 = vtanh.f32 %v956_v13 }
0x162b   :  { %v1328_v14 = vpop.eup %1327 }
0x162c   :  { %v1330_v15 = vpop.eup %1329  ;;  %984 = vrot.lane.b32.xlu1 %v1328_v14, %s1412_s19 }
0x162d   :  { %959 = vrot.lane.b32.xlu0 %v1330_v15, %s1412_s19 }
0x169e   :  { %v985_v33 = vpop.permute.xlu1 %984 }
0x169f   :  { %v987_v41 = vmul.f32 %v985_v33, %v969_v32  ;;  %v960_v34 = vpop.permute.xlu0 %959 }
0x16a0   :  { %v962_v35 = vmul.f32 %v960_v34, %v944_v4 }
0x16a1   :  { %989 = vrot.lane.b32.xlu0 %v987_v41, %s1419_s2 }
0x16a2   :  { %993 = vrot.lane.b32.xlu1 %v962_v35, %s1412_s19 }
0x1713   :  { %v990_v16 = vpop.permute.xlu0 %989 }
0x1714   :  { %v994_v36 = vpop.permute.xlu1 %993 }
0x1715   :  { %v996_v37 = vsel %vm155_vm2, %v990_v16, %v994_v36 }
0x1716   :  { %v997_v38 = vpack.c.bf16 %v996_v37, %v996_v37 }
0x1718   :  { %1177 = vmatmul.mubr.msk.bf16.vlgmr.msra.gmra.mrb[16].mxu1 %vm283_vm3, %v997_v38 }
0x17eb   :  { %v1035_v40 = vpop.f32.mrb[16].mxu1 }
0x17ec   :  { %v1036_v18 = vpop.f32.mrb[17].mxu1 }
0x17ed   :  { %v1041_v19 = vadd.f32 %v1585_v48, %v1036_v18  ;;  %v1038_v17 = vpop.f32.mrb[18].mxu1  ;;  %v1239_v48 = vld [vmem:[%s1752_s7] sm:$0xff]   ;;  %s1421_s7 = smov [#allocation7]  }
0x17ee   :  { %v1039_v21 = vpop.f32.mrb[19].mxu1  ;;  %1205 = vmatpush3.bf16.msra.mxu0 %v1239_v48 }
0x17ef   :  { %1331 = vtanh.f32 %v1041_v19  ;;  %v1042_v23 = vmul.f32 0.5, %v1041_v19  ;;  %1206 = vmatprep.subr.bf16.mxu0 %v1417_v0 }
0x17f1   :  { %1333 = vtanh.f32 %v1042_v23 }
0x17f2   :  { %1207 = vmatpush3.bf16.msra.mxu0 %v1240_v39 }
0x17f9   :  { %v1332_v22 = vpop.eup %1331 }
0x17fa   :  { %1049 = vrot.lane.b32.xlu0 %v1332_v22, %s1412_s19 }
0x17fb   :  { %v1334_v24 = vpop.eup %1333 }
0x17fc   :  { %v1044_v25 = vmul.f32 0.5, %v1334_v24 }
0x17fe   :  { %v1045_v26 = vadd.f32 0.5, %v1044_v25 }
0x1800   :  { %v1047_v29 = vmul.f32 %v1045_v26, %v956_v13 }
0x186c   :  { %v1050_v27 = vpop.permute.xlu0 %1049 }
0x186d   :  { %v1052_v28 = vmul.f32 %v1050_v27, %v1045_v26 }
0x186f   :  { %1054 = vrot.lane.b32.xlu1 %v1052_v28, %s1419_s2 }
0x18e1   :  { %v1055_v30 = vpop.permute.xlu1 %1054 }
0x18e2   :  { %v1057_v31 = vadd.f32 %v1055_v30, %v1047_v29 }
0x18e4   :  { %1335 = vtanh.f32 %v1057_v31 }
0x18ee   :  { %v1336_v42 = vpop.eup %1335 }
0x18ef   :  { %1060 = vrot.lane.b32.xlu0 %v1336_v42, %s1412_s19  ;;  %s1143_s19 = sshll.u32 %s1421_s7, 4  ;;  %s1144_s19 = int_to_ptr.vmem [resolvable:$true] %s1143_s19 }
0x18f0   :  { %s1383_s29 = scalar_lea.vmem %s1144_s19, 32  ;;  %p1388_p3 = scmp.lt.s32.totalorder %s1144_s19, %s1144_s19 }
0x18f1   :  { %p1384_p2 = scmp.ne.s32.totalorder %s1144_s19, %s1383_s29  ;;  %p1389_p4 = scmp.lt.s32.totalorder %s1383_s29, %s1383_s29 }
0x18f3   :  { %p1390_p5 = por %p1389_p4, %p1388_p3 }
0x18f5   :  { %p1391_p6 = pnand %p1390_p5, %p1384_p2 }
0x1961   :  { %v1061_v43 = vpop.permute.xlu0 %1060 }
0x1962   :  { %v1063_v44 = vmul.f32 %v1061_v43, %v1045_v26 }
0x1964   :  { %v1064_v45 = vpack.c.bf16 %v1063_v44, %v1063_v44 }
0x1966   :  { %1077 = vrot.lane.b32.xlu1 %v1064_v45, %s1419_s2 }
0x19d8   :  { %v1078_v46 = vpop.permute.xlu1 %1077 }
0x19d9   :  { %1209 = vmatmul.mubr.msk.bf16.vlgmr.msra.gmra.mrb[20].mxu0 %vm155_vm2, %v1078_v46 }
0x1aac   :  { %v1128_v49 = vpop.f32.mrb[20].mxu0 }
0x1aad   :  { %v1129_v50 = vadd.f32 %v1178_v47, %v1128_v49  ;;  %v1210_v51 = vpop.f32.mrb[21].mxu0 }
0x1aae   :  { %v1131_v0 = vpop.f32.mrb[22].mxu0 }
0x1aaf   :  { %1337 = vtanh.f32 %v1129_v50  ;;  %v1211_v52 = vpop.f32.mrb[23].mxu0 }
0x1ab9   :  { %v1338_v53 = vpop.eup %1337 }
0x1aba   :  { %1136 = vst.msk [vmem:[#allocation7] sm:$0x3] %vm1135_vm4, %v1338_v53 }
0x1abb   :  { %1394 = shalt.err (!%p1391_p6)
}
0x1abc   :  { %s1395_s11 = scalar_lea.hbm %s1754_s9, 32 }
0x1abd   :  { %p1396_p7 = scmp.ne.s32.totalorder %s1754_s9, %s1395_s11  ;;  %p1399_p8 = scmp.lt.u32.totalorder %s1395_s11, %s1754_s9 }
0x1abf   :  { %p1401_p9 = pnand %p1399_p8, %p1396_p7 }
0x1ac1   :  { %1404 = shalt.err (!%p1401_p9)
}
0x1ac2   :  { %1146 = dma.vmem_to_hbm [thread:$0]  %s1144_s19, 32, %s1754_s9, [#allocation4]  }
0x1ac3   :  { %1409 = dma.done.wait [#allocation4], 32  }
0x1ac4   :  { %1410 = vsyncadd [#allocation4], 4294967264 }
0x1ac5   :  { %1150 = vsyncpa [#allocation3], 1 }
0x1ac6   :  { %1151 = vsyncpa [#allocation6], 1 }
0x1ac7   :  { %1152 = vsyncpa [#allocation4], 1 }

</bundles_post_ra>
